<compile_context>
chip_gen: v7x
topology: tpu7x:2x2x1
jax: 0.10.0
libtpu: 0.0.40
codegen_flags: <defaults>
</compile_context>

<pallas_src>
import functools
import math

import jax
import jax.numpy as jnp
from jax.experimental import pallas as pl
from jax.experimental.pallas import tpu as pltpu


def _gmul_fc(w2, h3, wt, *, R, N, J, mxu_dtype):
    """GMul + fused fc for one layer.

    w2: (B, J*N, N)   all J graph operators stacked on the row axis
    h3: (B, N, F)     node features
    wt: (J, F, Cout)  per-operator fc weight slabs (fc1|fc2 already concatenated on Cout)
    Returns the pre-bias fc output, shape (R, Cout) with R = B*N.
    """
    # One batched (J*N, N) @ (N, F) dot per batch element (J-fold fewer, J-fold taller MXU
    # pushes than per-operator dots), then accumulate per operator against its weight slab.
    gx = jnp.einsum("bmn,bnf->bmf", w2.astype(mxu_dtype), h3.astype(mxu_dtype),
                    preferred_element_type=jnp.float32)            # (B, J*N, F)
    F = h3.shape[-1]
    acc = None
    for j in range(J):                                             # J is small and static
        gxj = gx[:, j * N:(j + 1) * N, :].reshape(R, F)            # rows of operator j
        d = jnp.dot(gxj.astype(mxu_dtype), wt[j].astype(mxu_dtype),
                    preferred_element_type=jnp.float32)            # (R, Cout)
        acc = d if acc is None else acc + d
    return acc


def _bias_relu_bn_store(y, prm, h_ref, *, C1, eps):
    """bias -> half ReLU -> BatchNorm1d (training-mode batch stats) -> store into h_ref.

    y: (R, C) pre-bias fc output; prm: (3, C) rows = [bias, gamma, beta].
    The fc1 half ([:, :C1]) gets the ReLU. BN is per-column, so normalizing the two halves
    independently is exact; the affine is fused into the store at static column offsets
    (no lane concat, single pass over the batch, nothing round-trips HBM).
    """
    y = y + prm[0:1, :]
    C = y.shape[1]
    inv_cnt = 1.0 / float(y.shape[0])
    for lo, hi, do_relu in ((0, C1, True), (C1, C, False)):
        ys = y[:, lo:hi]
        if do_relu:
            ys = jnp.maximum(ys, 0.0)
        mean = jnp.sum(ys, axis=0, keepdims=True) * inv_cnt
        d = ys - mean                                  # centered variance: f32-safe
        var = jnp.sum(d * d, axis=0, keepdims=True) * inv_cnt
        scale = jax.lax.rsqrt(var + eps) * prm[1:2, lo:hi]
        shift = prm[2:3, lo:hi] - mean * scale
        h_ref[:, lo:hi] = ys * scale + shift


def _gnn_stack_kernel(w_ref, x_ref, wt_ref, prm_ref, wtf_ref, bf_ref, o_ref, h_ref,
                      *, B, J, N, C, C1, NL, eps, mxu_dtype):
    # w_ref  : (B, J, N, N)    graph operators (transposed once in the wrapper)
    # x_ref  : (R, C)          layer-0 node features, zero-padded from F0=1 to C columns
    # wt_ref : (NL, J, C, C)   per-layer fc1|fc2 weight slabs (layer-0 slab zero-padded on F)
    # prm_ref: (NL, 3, C)      per-layer rows = [bias, gamma, beta]
    # wtf_ref: (J, C, NC), bf_ref: (1, NC)   final linear layer
    # o_ref  : (R, NC)         logits
    # h_ref  : (R, C) VMEM     node features, resident across all layers
    R = B * N
    w2 = w_ref[...].reshape(B, J * N, N)       # reused by every layer; never re-DMA'd
    h_ref[...] = x_ref[...]

    # TODO(synk): for large NL switch this static unroll to lax.fori_loop over the stacked
    #             (NL, J, C, C) slabs to bound program size.
    for l in range(NL):
        h3 = h_ref[...].reshape(B, N, C)
        y = _gmul_fc(w2, h3, wt_ref[l], R=R, N=N, J=J, mxu_dtype=mxu_dtype)
        _bias_relu_bn_store(y, prm_ref[l], h_ref, C1=C1, eps=eps)

    # gnn_atomic_final: GMul + Linear, no activation / batchnorm.
    h3 = h_ref[...].reshape(B, N, C)
    y = _gmul_fc(w2, h3, wtf_ref[...], R=R, N=N, J=J, mxu_dtype=mxu_dtype)
    o_ref[...] = y + bf_ref[...]


def gnn_multiclass_forward(W, x, params, *, eps=1e-5, mxu_dtype=jnp.float32):
    """Pallas forward of GNN_multiclass. Returns the (B, N, n_classes) logits.

    mxu_dtype=jnp.bfloat16 casts only the MXU operands (W_t, h, weight slabs) -- recommended on
    v6e/v7x (full-rate bf16 MXU, halved W_t footprint); BN / ReLU / affine stay f32.
    """
    B, N, _, J = W.shape
    R = B * N
    wt_all = params["wt_layers"]                      # (NL, J, C, C)
    prm_all = params["prm_layers"]                    # (NL, 3, C)
    wtf = params["wt_final"]                          # (J, C, NC)
    bf = params["b_final"]                            # (1, NC)
    NL, _, C, _ = wt_all.shape
    NC = wtf.shape[-1]

    # One-time layout change: the same W feeds every layer, so the (B,N,N,J)->(B,J,N,N)
    # transpose of the largest tensor is paid once for the whole fused stack.
    W_t = jnp.transpose(W, (0, 3, 1, 2))
    if mxu_dtype != jnp.float32:
        W_t = W_t.astype(mxu_dtype)                   # halve the dominant HBM->VMEM traffic

    # Zero-pad the F0=1 layer-0 features to C columns so every atomic layer shares the same
    # (J, C, C) weight-slab shape (no degenerate K=1 matmul path inside the kernel).
    F0 = x.shape[-1]
    x_pad = x if F0 == C else jnp.concatenate(
        [x, jnp.zeros((B, N, C - F0), x.dtype)], axis=-1)
    x_flat = x_pad.reshape(R, C).astype(jnp.float32)

    kernel = functools.partial(_gnn_stack_kernel, B=B, J=J, N=N, C=C, C1=C // 2,
                               NL=NL, eps=eps, mxu_dtype=mxu_dtype)
    # Whole layer stack in ONE pallas_call / one grid step: no per-layer launch overhead, and
    # W_t plus the node features h never round-trip HBM between layers.
    out = pl.pallas_call(
        kernel,
        out_shape=jax.ShapeDtypeStruct((R, NC), jnp.float32),
        grid=(1,),
        in_specs=[
            pl.BlockSpec((B, J, N, N), lambda i: (0, 0, 0, 0)),
            pl.BlockSpec((R, C), lambda i: (0, 0)),
            pl.BlockSpec((NL, J, C, C), lambda i: (0, 0, 0, 0)),
            pl.BlockSpec((NL, 3, C), lambda i: (0, 0, 0)),
            pl.BlockSpec((J, C, NC), lambda i: (0, 0, 0)),
            pl.BlockSpec((1, NC), lambda i: (0, 0)),
        ],
        out_specs=pl.BlockSpec((R, NC), lambda i: (0, 0)),
        scratch_shapes=[pltpu.VMEM((R, C), jnp.float32)],
        compiler_params=pltpu.CompilerParams(dimension_semantics=("arbitrary",)),
    )(W_t, x_flat, wt_all, prm_all, wtf, bf)
    return out.reshape(B, N, NC)


# ------------------------ parameter init (matches the PyTorch shapes) ------------------------

def init_gnn_params(key, num_features, num_layers, J, n_classes):
    C = num_features
    C1 = C // 2
    C2 = C - C1
    keys = jax.random.split(key, num_layers + 2)

    def atomic(k, F):
        num_inputs = J * F
        lim = 1.0 / math.sqrt(num_inputs)
        k1, k2, k3, k4 = jax.random.split(k, 4)
        w1 = jax.random.uniform(k1, (C1, num_inputs), jnp.float32, -lim, lim)   # fc1.weight
        b1 = jax.random.uniform(k2, (C1,), jnp.float32, -lim, lim)              # fc1.bias
        w2 = jax.random.uniform(k3, (C2, num_inputs), jnp.float32, -lim, lim)   # fc2.weight
        b2 = jax.random.uniform(k4, (C2,), jnp.float32, -lim, lim)              # fc2.bias
        wt = jnp.concatenate([w1.T.reshape(J, F, C1), w2.T.reshape(J, F, C2)], axis=-1)
        if F < C:   # zero-pad the layer-0 slab on F so all layers share the (J, C, C) shape
            wt = jnp.concatenate([wt, jnp.zeros((J, C - F, C), jnp.float32)], axis=1)
        prm = jnp.stack([jnp.concatenate([b1, b2]),            # bias
                         jnp.ones((C,), jnp.float32),          # bn.weight (gamma)
                         jnp.zeros((C,), jnp.float32)])        # bn.bias   (beta)
        return wt, prm

    layers = [atomic(keys[0], 1)] + [atomic(keys[i + 1], C) for i in range(num_layers)]
    wt_layers = jnp.stack([w for w, _ in layers])              # (num_layers+1, J, C, C)
    prm_layers = jnp.stack([p for _, p in layers])             # (num_layers+1, 3, C)

    num_inputs = J * C                                         # featuremap_end == featuremap_mi
    lim = 1.0 / math.sqrt(num_inputs)
    kf1, kf2 = jax.random.split(keys[-1])
    wf = jax.random.uniform(kf1, (n_classes, num_inputs), jnp.float32, -lim, lim)
    bfb = jax.random.uniform(kf2, (n_classes,), jnp.float32, -lim, lim)
    return {"wt_layers": wt_layers, "prm_layers": prm_layers,
            "wt_final": wf.T.reshape(J, C, n_classes), "b_final": bfb.reshape(1, n_classes)}


# ---------------------- pure-JAX reference (mirrors the PyTorch module) ----------------------

def _reference_forward(W, x, params, eps=1e-5):
    B, N, _, J = W.shape
    wt_layers, prm_layers = params["wt_layers"], params["prm_layers"]
    C = wt_layers.shape[-1]
    C1 = C // 2
    h = x
    for l in range(wt_layers.shape[0]):
        F = h.shape[-1]
        wt = wt_layers[l][:, :F, :]                            # drop layer-0 zero padding
        prm = prm_layers[l]
        gm = jnp.einsum("bnmj,bmf->bnjf", W, h).reshape(B * N, J * F)      # GMul
        y = gm @ wt.reshape(J * F, C) + prm[0]
        y = jnp.concatenate([jnp.maximum(y[:, :C1], 0.0), y[:, C1:]], axis=1)
        mean = y.mean(axis=0, keepdims=True)
        var = ((y - mean) ** 2).mean(axis=0, keepdims=True)
        y = (y - mean) / jnp.sqrt(var + eps) * prm[1] + prm[2]
        h = y.reshape(B, N, C)
    F = h.shape[-1]
    gm = jnp.einsum("bnmj,bmf->bnjf", W, h).reshape(B * N, J * F)
    out = gm @ params["wt_final"].reshape(J * F, -1) + params["b_final"]
    return out.reshape(B, N, -1)


if __name__ == "__main__":
    # Small shapes consistent with the module: featuremap_in = [1, 1, num_features] => x has 1 feature.
    B, N = 2, 16
    num_features, num_layers, J, n_classes = 8, 2, 2, 2

    key = jax.random.PRNGKey(0)
    k_w, k_x, k_p = jax.random.split(key, 3)
    W = jax.random.normal(k_w, (B, N, N, J), jnp.float32)
    x = jax.random.normal(k_x, (B, N, 1), jnp.float32)
    params = init_gnn_params(k_p, num_features, num_layers, J, n_classes)

    # f32 MXU path (reference-exact).
    fwd = jax.jit(gnn_multiclass_forward)
    out = jax.block_until_ready(fwd(W, x, params))
    ref = _reference_forward(W, x, params)
    assert out.shape == (B, N, n_classes)
    assert jnp.allclose(out, ref, atol=1e-4, rtol=1e-4), "f32 mismatch vs reference"

    # bf16 MXU-operand path (recommended on v6e/v7x); f32 accumulate + f32 BN => loose tolerance.
    fwd_bf16 = jax.jit(functools.partial(gnn_multiclass_forward, mxu_dtype=jnp.bfloat16))
    out_bf16 = jax.block_until_ready(fwd_bf16(W, x, params))
    assert bool(jnp.all(jnp.isfinite(out_bf16)))
    assert jnp.allclose(out_bf16, ref, atol=0.15, rtol=0.15), "bf16 mismatch vs reference"

    print("KERNEL_OK")
</pallas_src>

<mosaic_0001>
module attributes {stable_mosaic.version = 11 : i64} {
  func.func @_gnn_stack_kernel(%arg0: i32, %arg1: memref<2x2x16x16xf32, #tpu.memory_space<vmem>>, %arg2: memref<32x8xf32, #tpu.memory_space<vmem>>, %arg3: memref<3x2x8x8xf32, #tpu.memory_space<vmem>>, %arg4: memref<3x3x8xf32, #tpu.memory_space<vmem>>, %arg5: memref<2x8x2xf32, #tpu.memory_space<vmem>>, %arg6: memref<1x2xf32, #tpu.memory_space<vmem>>, %arg7: memref<32x2xf32, #tpu.memory_space<vmem>>, %arg8: memref<32x8xf32, #tpu.memory_space<vmem>>) attributes {dimension_semantics = [#tpu.dimension_semantics<arbitrary>], iteration_bounds = array<i64: 1>, scalar_prefetch = 0 : i64, scratch_operands = 1 : i64, tpu.core_type = #tpu.core_type<tc>, window_params = [{pipeline_mode = #tpu.pipeline_mode<synchronous>, transform_indices = @transform_0, window_bounds = array<i64: 2, 2, 16, 16>}, {pipeline_mode = #tpu.pipeline_mode<synchronous>, transform_indices = @transform_1, window_bounds = array<i64: 32, 8>}, {pipeline_mode = #tpu.pipeline_mode<synchronous>, transform_indices = @transform_2, window_bounds = array<i64: 3, 2, 8, 8>}, {pipeline_mode = #tpu.pipeline_mode<synchronous>, transform_indices = @transform_3, window_bounds = array<i64: 3, 3, 8>}, {pipeline_mode = #tpu.pipeline_mode<synchronous>, transform_indices = @transform_4, window_bounds = array<i64: 2, 8, 2>}, {pipeline_mode = #tpu.pipeline_mode<synchronous>, transform_indices = @transform_5, window_bounds = array<i64: 1, 2>}, {pipeline_mode = #tpu.pipeline_mode<synchronous>, transform_indices = @transform_6, window_bounds = array<i64: 32, 2>}]} {
    %c0 = arith.constant 0 : index
    %c0_0 = arith.constant 0 : index
    %c0_1 = arith.constant 0 : index
    %c0_2 = arith.constant 0 : index
    %0 = vector.load %arg1[%c0, %c0_0, %c0_1, %c0_2] : memref<2x2x16x16xf32, #tpu.memory_space<vmem>>, vector<2x2x16x16xf32>
    %1 = vector.shape_cast %0 : vector<2x2x16x16xf32> to vector<2x32x16xf32>
    %c0_3 = arith.constant 0 : index
    %c0_4 = arith.constant 0 : index
    %2 = vector.load %arg2[%c0_3, %c0_4] : memref<32x8xf32, #tpu.memory_space<vmem>>, vector<32x8xf32>
    %c0_5 = arith.constant 0 : index
    %c0_6 = arith.constant 0 : index
    %3 = vector.load %arg8[%c0_5, %c0_6] : memref<32x8xf32, #tpu.memory_space<vmem>>, vector<32x8xf32>
    tpu.vector_store %arg8[%c0_5, %c0_6], %2 {strides = array<i32>} : memref<32x8xf32, #tpu.memory_space<vmem>>, vector<32x8xf32>,
    %c0_7 = arith.constant 0 : index
    %c0_8 = arith.constant 0 : index
    %4 = vector.load %arg8[%c0_7, %c0_8] : memref<32x8xf32, #tpu.memory_space<vmem>>, vector<32x8xf32>
    %5 = vector.shape_cast %4 : vector<32x8xf32> to vector<2x16x8xf32>
    %c0_9 = arith.constant 0 : index
    %c0_10 = arith.constant 0 : index
    %c0_11 = arith.constant 0 : index
    %c0_12 = arith.constant 0 : index
    %6 = vector.load %arg3[%c0_9, %c0_10, %c0_11, %c0_12] : memref<3x2x8x8xf32, #tpu.memory_space<vmem>>, vector<1x2x8x8xf32>
    %7 = vector.shape_cast %6 : vector<1x2x8x8xf32> to vector<2x8x8xf32>
    "tpu.trace_start"() <{level = 10 : i32, message = "bmn,bnf->bmf"}> : () -> ()
    %cst = arith.constant dense<0.000000e+00> : vector<2x32x8xf32>
    %8 = tpu.matmul %1, %5, %cst {dimension_numbers = #tpu.dot_dimension_numbers<[2], [1], [1], [2], [0, 0, 0, 1, 1, 2], [0], [0]>} : vector<2x32x16xf32>, vector<2x16x8xf32>, vector<2x32x8xf32> -> vector<2x32x8xf32>
    "tpu.trace_stop"() : () -> ()
    %9 = vector.extract_strided_slice %8 {offsets = [0, 0, 0], sizes = [2, 16, 8], strides = [1, 1, 1]} : vector<2x32x8xf32> to vector<2x16x8xf32>
    %10 = vector.shape_cast %9 : vector<2x16x8xf32> to vector<32x8xf32>
    %11 = vector.extract_strided_slice %7 {offsets = [0, 0, 0], sizes = [1, 8, 8], strides = [1, 1, 1]} : vector<2x8x8xf32> to vector<1x8x8xf32>
    %12 = vector.shape_cast %11 : vector<1x8x8xf32> to vector<8x8xf32>
    %cst_13 = arith.constant dense<0.000000e+00> : vector<32x8xf32>
    %13 = tpu.matmul %10, %12, %cst_13 {dimension_numbers = #tpu.dot_dimension_numbers<[1], [0], [0], [1], [0, 0, 1, 1], [], []>} : vector<32x8xf32>, vector<8x8xf32>, vector<32x8xf32> -> vector<32x8xf32>
    %14 = vector.extract_strided_slice %8 {offsets = [0, 16, 0], sizes = [2, 16, 8], strides = [1, 1, 1]} : vector<2x32x8xf32> to vector<2x16x8xf32>
    %15 = vector.shape_cast %14 : vector<2x16x8xf32> to vector<32x8xf32>
    %16 = vector.extract_strided_slice %7 {offsets = [1, 0, 0], sizes = [1, 8, 8], strides = [1, 1, 1]} : vector<2x8x8xf32> to vector<1x8x8xf32>
    %17 = vector.shape_cast %16 : vector<1x8x8xf32> to vector<8x8xf32>
    %cst_14 = arith.constant dense<0.000000e+00> : vector<32x8xf32>
    %18 = tpu.matmul %15, %17, %cst_14 {dimension_numbers = #tpu.dot_dimension_numbers<[1], [0], [0], [1], [0, 0, 1, 1], [], []>} : vector<32x8xf32>, vector<8x8xf32>, vector<32x8xf32> -> vector<32x8xf32>
    %19 = arith.addf %13, %18 : vector<32x8xf32>
    %c0_15 = arith.constant 0 : index
    %c0_16 = arith.constant 0 : index
    %c0_17 = arith.constant 0 : index
    %20 = vector.load %arg4[%c0_15, %c0_16, %c0_17] : memref<3x3x8xf32, #tpu.memory_space<vmem>>, vector<1x3x8xf32>
    %21 = vector.shape_cast %20 : vector<1x3x8xf32> to vector<3x8xf32>
    %22 = vector.extract_strided_slice %21 {offsets = [0, 0], sizes = [1, 8], strides = [1, 1]} : vector<3x8xf32> to vector<1x8xf32>
    %23 = vector.broadcast %22 : vector<1x8xf32> to vector<32x8xf32>
    %24 = arith.addf %19, %23 : vector<32x8xf32>
    %25 = vector.extract_strided_slice %24 {offsets = [0, 0], sizes = [32, 4], strides = [1, 1]} : vector<32x8xf32> to vector<32x4xf32>
    %cst_18 = arith.constant 0.000000e+00 : f32
    %26 = vector.broadcast %cst_18 : f32 to vector<32x4xf32>
    %27 = arith.maximumf %25, %26 : vector<32x4xf32>
    %cst_19 = arith.constant dense<0.000000e+00> : vector<4xf32>
    %28 = vector.multi_reduction <add>, %27, %cst_19 [0] : vector<32x4xf32> to vector<4xf32>
    %29 = vector.shape_cast %28 : vector<4xf32> to vector<1x4xf32>
    %cst_20 = arith.constant 3.125000e-02 : f32
    %30 = vector.broadcast %cst_20 : f32 to vector<1x4xf32>
    %31 = arith.mulf %29, %30 : vector<1x4xf32>
    %32 = vector.broadcast %31 : vector<1x4xf32> to vector<32x4xf32>
    %33 = arith.subf %27, %32 : vector<32x4xf32>
    %34 = arith.mulf %33, %33 : vector<32x4xf32>
    %cst_21 = arith.constant dense<0.000000e+00> : vector<4xf32>
    %35 = vector.multi_reduction <add>, %34, %cst_21 [0] : vector<32x4xf32> to vector<4xf32>
    %36 = vector.shape_cast %35 : vector<4xf32> to vector<1x4xf32>
    %cst_22 = arith.constant 3.125000e-02 : f32
    %37 = vector.broadcast %cst_22 : f32 to vector<1x4xf32>
    %38 = arith.mulf %36, %37 : vector<1x4xf32>
    %cst_23 = arith.constant 9.99999974E-6 : f32
    %39 = vector.broadcast %cst_23 : f32 to vector<1x4xf32>
    %40 = arith.addf %38, %39 : vector<1x4xf32>
    %41 = math.rsqrt %40 : vector<1x4xf32>
    %42 = vector.extract_strided_slice %21 {offsets = [1, 0], sizes = [1, 4], strides = [1, 1]} : vector<3x8xf32> to vector<1x4xf32>
    %43 = arith.mulf %41, %42 : vector<1x4xf32>
    %44 = vector.extract_strided_slice %21 {offsets = [2, 0], sizes = [1, 4], strides = [1, 1]} : vector<3x8xf32> to vector<1x4xf32>
    %45 = arith.mulf %31, %43 : vector<1x4xf32>
    %46 = arith.subf %44, %45 : vector<1x4xf32>
    %47 = vector.broadcast %43 : vector<1x4xf32> to vector<32x4xf32>
    %48 = arith.mulf %27, %47 : vector<32x4xf32>
    %49 = vector.broadcast %46 : vector<1x4xf32> to vector<32x4xf32>
    %50 = arith.addf %48, %49 : vector<32x4xf32>
    %c0_24 = arith.constant 0 : index
    %c0_25 = arith.constant 0 : index
    %51 = vector.load %arg8[%c0_24, %c0_25] : memref<32x8xf32, #tpu.memory_space<vmem>>, vector<32x4xf32>
    tpu.vector_store %arg8[%c0_24, %c0_25], %50 {strides = array<i32>} : memref<32x8xf32, #tpu.memory_space<vmem>>, vector<32x4xf32>,
    %52 = vector.extract_strided_slice %24 {offsets = [0, 4], sizes = [32, 4], strides = [1, 1]} : vector<32x8xf32> to vector<32x4xf32>
    %cst_26 = arith.constant dense<0.000000e+00> : vector<4xf32>
    %53 = vector.multi_reduction <add>, %52, %cst_26 [0] : vector<32x4xf32> to vector<4xf32>
    %54 = vector.shape_cast %53 : vector<4xf32> to vector<1x4xf32>
    %cst_27 = arith.constant 3.125000e-02 : f32
    %55 = vector.broadcast %cst_27 : f32 to vector<1x4xf32>
    %56 = arith.mulf %54, %55 : vector<1x4xf32>
    %57 = vector.broadcast %56 : vector<1x4xf32> to vector<32x4xf32>
    %58 = arith.subf %52, %57 : vector<32x4xf32>
    %59 = arith.mulf %58, %58 : vector<32x4xf32>
    %cst_28 = arith.constant dense<0.000000e+00> : vector<4xf32>
    %60 = vector.multi_reduction <add>, %59, %cst_28 [0] : vector<32x4xf32> to vector<4xf32>
    %61 = vector.shape_cast %60 : vector<4xf32> to vector<1x4xf32>
    %cst_29 = arith.constant 3.125000e-02 : f32
    %62 = vector.broadcast %cst_29 : f32 to vector<1x4xf32>
    %63 = arith.mulf %61, %62 : vector<1x4xf32>
    %cst_30 = arith.constant 9.99999974E-6 : f32
    %64 = vector.broadcast %cst_30 : f32 to vector<1x4xf32>
    %65 = arith.addf %63, %64 : vector<1x4xf32>
    %66 = math.rsqrt %65 : vector<1x4xf32>
    %67 = vector.extract_strided_slice %21 {offsets = [1, 4], sizes = [1, 4], strides = [1, 1]} : vector<3x8xf32> to vector<1x4xf32>
    %68 = arith.mulf %66, %67 : vector<1x4xf32>
    %69 = vector.extract_strided_slice %21 {offsets = [2, 4], sizes = [1, 4], strides = [1, 1]} : vector<3x8xf32> to vector<1x4xf32>
    %70 = arith.mulf %56, %68 : vector<1x4xf32>
    %71 = arith.subf %69, %70 : vector<1x4xf32>
    %72 = vector.broadcast %68 : vector<1x4xf32> to vector<32x4xf32>
    %73 = arith.mulf %52, %72 : vector<32x4xf32>
    %74 = vector.broadcast %71 : vector<1x4xf32> to vector<32x4xf32>
    %75 = arith.addf %73, %74 : vector<32x4xf32>
    %c0_31 = arith.constant 0 : index
    %c4 = arith.constant 4 : index
    %76 = vector.load %arg8[%c0_31, %c4] : memref<32x8xf32, #tpu.memory_space<vmem>>, vector<32x4xf32>
    tpu.vector_store %arg8[%c0_31, %c4], %75 {strides = array<i32>} : memref<32x8xf32, #tpu.memory_space<vmem>>, vector<32x4xf32>,
    %c0_32 = arith.constant 0 : index
    %c0_33 = arith.constant 0 : index
    %77 = vector.load %arg8[%c0_32, %c0_33] : memref<32x8xf32, #tpu.memory_space<vmem>>, vector<32x8xf32>
    %78 = vector.shape_cast %77 : vector<32x8xf32> to vector<2x16x8xf32>
    %c1 = arith.constant 1 : index
    %c0_34 = arith.constant 0 : index
    %c0_35 = arith.constant 0 : index
    %c0_36 = arith.constant 0 : index
    %79 = vector.load %arg3[%c1, %c0_34, %c0_35, %c0_36] : memref<3x2x8x8xf32, #tpu.memory_space<vmem>>, vector<1x2x8x8xf32>
    %80 = vector.shape_cast %79 : vector<1x2x8x8xf32> to vector<2x8x8xf32>
    "tpu.trace_start"() <{level = 10 : i32, message = "bmn,bnf->bmf"}> : () -> ()
    %cst_37 = arith.constant dense<0.000000e+00> : vector<2x32x8xf32>
    %81 = tpu.matmul %1, %78, %cst_37 {dimension_numbers = #tpu.dot_dimension_numbers<[2], [1], [1], [2], [0, 0, 0, 1, 1, 2], [0], [0]>} : vector<2x32x16xf32>, vector<2x16x8xf32>, vector<2x32x8xf32> -> vector<2x32x8xf32>
    "tpu.trace_stop"() : () -> ()
    %82 = vector.extract_strided_slice %81 {offsets = [0, 0, 0], sizes = [2, 16, 8], strides = [1, 1, 1]} : vector<2x32x8xf32> to vector<2x16x8xf32>
    %83 = vector.shape_cast %82 : vector<2x16x8xf32> to vector<32x8xf32>
    %84 = vector.extract_strided_slice %80 {offsets = [0, 0, 0], sizes = [1, 8, 8], strides = [1, 1, 1]} : vector<2x8x8xf32> to vector<1x8x8xf32>
    %85 = vector.shape_cast %84 : vector<1x8x8xf32> to vector<8x8xf32>
    %cst_38 = arith.constant dense<0.000000e+00> : vector<32x8xf32>
    %86 = tpu.matmul %83, %85, %cst_38 {dimension_numbers = #tpu.dot_dimension_numbers<[1], [0], [0], [1], [0, 0, 1, 1], [], []>} : vector<32x8xf32>, vector<8x8xf32>, vector<32x8xf32> -> vector<32x8xf32>
    %87 = vector.extract_strided_slice %81 {offsets = [0, 16, 0], sizes = [2, 16, 8], strides = [1, 1, 1]} : vector<2x32x8xf32> to vector<2x16x8xf32>
    %88 = vector.shape_cast %87 : vector<2x16x8xf32> to vector<32x8xf32>
    %89 = vector.extract_strided_slice %80 {offsets = [1, 0, 0], sizes = [1, 8, 8], strides = [1, 1, 1]} : vector<2x8x8xf32> to vector<1x8x8xf32>
    %90 = vector.shape_cast %89 : vector<1x8x8xf32> to vector<8x8xf32>
    %cst_39 = arith.constant dense<0.000000e+00> : vector<32x8xf32>
    %91 = tpu.matmul %88, %90, %cst_39 {dimension_numbers = #tpu.dot_dimension_numbers<[1], [0], [0], [1], [0, 0, 1, 1], [], []>} : vector<32x8xf32>, vector<8x8xf32>, vector<32x8xf32> -> vector<32x8xf32>
    %92 = arith.addf %86, %91 : vector<32x8xf32>
    %c1_40 = arith.constant 1 : index
    %c0_41 = arith.constant 0 : index
    %c0_42 = arith.constant 0 : index
    %93 = vector.load %arg4[%c1_40, %c0_41, %c0_42] : memref<3x3x8xf32, #tpu.memory_space<vmem>>, vector<1x3x8xf32>
    %94 = vector.shape_cast %93 : vector<1x3x8xf32> to vector<3x8xf32>
    %95 = vector.extract_strided_slice %94 {offsets = [0, 0], sizes = [1, 8], strides = [1, 1]} : vector<3x8xf32> to vector<1x8xf32>
    %96 = vector.broadcast %95 : vector<1x8xf32> to vector<32x8xf32>
    %97 = arith.addf %92, %96 : vector<32x8xf32>
    %98 = vector.extract_strided_slice %97 {offsets = [0, 0], sizes = [32, 4], strides = [1, 1]} : vector<32x8xf32> to vector<32x4xf32>
    %cst_43 = arith.constant 0.000000e+00 : f32
    %99 = vector.broadcast %cst_43 : f32 to vector<32x4xf32>
    %100 = arith.maximumf %98, %99 : vector<32x4xf32>
    %cst_44 = arith.constant dense<0.000000e+00> : vector<4xf32>
    %101 = vector.multi_reduction <add>, %100, %cst_44 [0] : vector<32x4xf32> to vector<4xf32>
    %102 = vector.shape_cast %101 : vector<4xf32> to vector<1x4xf32>
    %cst_45 = arith.constant 3.125000e-02 : f32
    %103 = vector.broadcast %cst_45 : f32 to vector<1x4xf32>
    %104 = arith.mulf %102, %103 : vector<1x4xf32>
    %105 = vector.broadcast %104 : vector<1x4xf32> to vector<32x4xf32>
    %106 = arith.subf %100, %105 : vector<32x4xf32>
    %107 = arith.mulf %106, %106 : vector<32x4xf32>
    %cst_46 = arith.constant dense<0.000000e+00> : vector<4xf32>
    %108 = vector.multi_reduction <add>, %107, %cst_46 [0] : vector<32x4xf32> to vector<4xf32>
    %109 = vector.shape_cast %108 : vector<4xf32> to vector<1x4xf32>
    %cst_47 = arith.constant 3.125000e-02 : f32
    %110 = vector.broadcast %cst_47 : f32 to vector<1x4xf32>
    %111 = arith.mulf %109, %110 : vector<1x4xf32>
    %cst_48 = arith.constant 9.99999974E-6 : f32
    %112 = vector.broadcast %cst_48 : f32 to vector<1x4xf32>
    %113 = arith.addf %111, %112 : vector<1x4xf32>
    %114 = math.rsqrt %113 : vector<1x4xf32>
    %115 = vector.extract_strided_slice %94 {offsets = [1, 0], sizes = [1, 4], strides = [1, 1]} : vector<3x8xf32> to vector<1x4xf32>
    %116 = arith.mulf %114, %115 : vector<1x4xf32>
    %117 = vector.extract_strided_slice %94 {offsets = [2, 0], sizes = [1, 4], strides = [1, 1]} : vector<3x8xf32> to vector<1x4xf32>
    %118 = arith.mulf %104, %116 : vector<1x4xf32>
    %119 = arith.subf %117, %118 : vector<1x4xf32>
    %120 = vector.broadcast %116 : vector<1x4xf32> to vector<32x4xf32>
    %121 = arith.mulf %100, %120 : vector<32x4xf32>
    %122 = vector.broadcast %119 : vector<1x4xf32> to vector<32x4xf32>
    %123 = arith.addf %121, %122 : vector<32x4xf32>
    %c0_49 = arith.constant 0 : index
    %c0_50 = arith.constant 0 : index
    %124 = vector.load %arg8[%c0_49, %c0_50] : memref<32x8xf32, #tpu.memory_space<vmem>>, vector<32x4xf32>
    tpu.vector_store %arg8[%c0_49, %c0_50], %123 {strides = array<i32>} : memref<32x8xf32, #tpu.memory_space<vmem>>, vector<32x4xf32>,
    %125 = vector.extract_strided_slice %97 {offsets = [0, 4], sizes = [32, 4], strides = [1, 1]} : vector<32x8xf32> to vector<32x4xf32>
    %cst_51 = arith.constant dense<0.000000e+00> : vector<4xf32>
    %126 = vector.multi_reduction <add>, %125, %cst_51 [0] : vector<32x4xf32> to vector<4xf32>
    %127 = vector.shape_cast %126 : vector<4xf32> to vector<1x4xf32>
    %cst_52 = arith.constant 3.125000e-02 : f32
    %128 = vector.broadcast %cst_52 : f32 to vector<1x4xf32>
    %129 = arith.mulf %127, %128 : vector<1x4xf32>
    %130 = vector.broadcast %129 : vector<1x4xf32> to vector<32x4xf32>
    %131 = arith.subf %125, %130 : vector<32x4xf32>
    %132 = arith.mulf %131, %131 : vector<32x4xf32>
    %cst_53 = arith.constant dense<0.000000e+00> : vector<4xf32>
    %133 = vector.multi_reduction <add>, %132, %cst_53 [0] : vector<32x4xf32> to vector<4xf32>
    %134 = vector.shape_cast %133 : vector<4xf32> to vector<1x4xf32>
    %cst_54 = arith.constant 3.125000e-02 : f32
    %135 = vector.broadcast %cst_54 : f32 to vector<1x4xf32>
    %136 = arith.mulf %134, %135 : vector<1x4xf32>
    %cst_55 = arith.constant 9.99999974E-6 : f32
    %137 = vector.broadcast %cst_55 : f32 to vector<1x4xf32>
    %138 = arith.addf %136, %137 : vector<1x4xf32>
    %139 = math.rsqrt %138 : vector<1x4xf32>
    %140 = vector.extract_strided_slice %94 {offsets = [1, 4], sizes = [1, 4], strides = [1, 1]} : vector<3x8xf32> to vector<1x4xf32>
    %141 = arith.mulf %139, %140 : vector<1x4xf32>
    %142 = vector.extract_strided_slice %94 {offsets = [2, 4], sizes = [1, 4], strides = [1, 1]} : vector<3x8xf32> to vector<1x4xf32>
    %143 = arith.mulf %129, %141 : vector<1x4xf32>
    %144 = arith.subf %142, %143 : vector<1x4xf32>
    %145 = vector.broadcast %141 : vector<1x4xf32> to vector<32x4xf32>
    %146 = arith.mulf %125, %145 : vector<32x4xf32>
    %147 = vector.broadcast %144 : vector<1x4xf32> to vector<32x4xf32>
    %148 = arith.addf %146, %147 : vector<32x4xf32>
    %c0_56 = arith.constant 0 : index
    %c4_57 = arith.constant 4 : index
    %149 = vector.load %arg8[%c0_56, %c4_57] : memref<32x8xf32, #tpu.memory_space<vmem>>, vector<32x4xf32>
    tpu.vector_store %arg8[%c0_56, %c4_57], %148 {strides = array<i32>} : memref<32x8xf32, #tpu.memory_space<vmem>>, vector<32x4xf32>,
    %c0_58 = arith.constant 0 : index
    %c0_59 = arith.constant 0 : index
    %150 = vector.load %arg8[%c0_58, %c0_59] : memref<32x8xf32, #tpu.memory_space<vmem>>, vector<32x8xf32>
    %151 = vector.shape_cast %150 : vector<32x8xf32> to vector<2x16x8xf32>
    %c2 = arith.constant 2 : index
    %c0_60 = arith.constant 0 : index
    %c0_61 = arith.constant 0 : index
    %c0_62 = arith.constant 0 : index
    %152 = vector.load %arg3[%c2, %c0_60, %c0_61, %c0_62] : memref<3x2x8x8xf32, #tpu.memory_space<vmem>>, vector<1x2x8x8xf32>
    %153 = vector.shape_cast %152 : vector<1x2x8x8xf32> to vector<2x8x8xf32>
    "tpu.trace_start"() <{level = 10 : i32, message = "bmn,bnf->bmf"}> : () -> ()
    %cst_63 = arith.constant dense<0.000000e+00> : vector<2x32x8xf32>
    %154 = tpu.matmul %1, %151, %cst_63 {dimension_numbers = #tpu.dot_dimension_numbers<[2], [1], [1], [2], [0, 0, 0, 1, 1, 2], [0], [0]>} : vector<2x32x16xf32>, vector<2x16x8xf32>, vector<2x32x8xf32> -> vector<2x32x8xf32>
    "tpu.trace_stop"() : () -> ()
    %155 = vector.extract_strided_slice %154 {offsets = [0, 0, 0], sizes = [2, 16, 8], strides = [1, 1, 1]} : vector<2x32x8xf32> to vector<2x16x8xf32>
    %156 = vector.shape_cast %155 : vector<2x16x8xf32> to vector<32x8xf32>
    %157 = vector.extract_strided_slice %153 {offsets = [0, 0, 0], sizes = [1, 8, 8], strides = [1, 1, 1]} : vector<2x8x8xf32> to vector<1x8x8xf32>
    %158 = vector.shape_cast %157 : vector<1x8x8xf32> to vector<8x8xf32>
    %cst_64 = arith.constant dense<0.000000e+00> : vector<32x8xf32>
    %159 = tpu.matmul %156, %158, %cst_64 {dimension_numbers = #tpu.dot_dimension_numbers<[1], [0], [0], [1], [0, 0, 1, 1], [], []>} : vector<32x8xf32>, vector<8x8xf32>, vector<32x8xf32> -> vector<32x8xf32>
    %160 = vector.extract_strided_slice %154 {offsets = [0, 16, 0], sizes = [2, 16, 8], strides = [1, 1, 1]} : vector<2x32x8xf32> to vector<2x16x8xf32>
    %161 = vector.shape_cast %160 : vector<2x16x8xf32> to vector<32x8xf32>
    %162 = vector.extract_strided_slice %153 {offsets = [1, 0, 0], sizes = [1, 8, 8], strides = [1, 1, 1]} : vector<2x8x8xf32> to vector<1x8x8xf32>
    %163 = vector.shape_cast %162 : vector<1x8x8xf32> to vector<8x8xf32>
    %cst_65 = arith.constant dense<0.000000e+00> : vector<32x8xf32>
    %164 = tpu.matmul %161, %163, %cst_65 {dimension_numbers = #tpu.dot_dimension_numbers<[1], [0], [0], [1], [0, 0, 1, 1], [], []>} : vector<32x8xf32>, vector<8x8xf32>, vector<32x8xf32> -> vector<32x8xf32>
    %165 = arith.addf %159, %164 : vector<32x8xf32>
    %c2_66 = arith.constant 2 : index
    %c0_67 = arith.constant 0 : index
    %c0_68 = arith.constant 0 : index
    %166 = vector.load %arg4[%c2_66, %c0_67, %c0_68] : memref<3x3x8xf32, #tpu.memory_space<vmem>>, vector<1x3x8xf32>
    %167 = vector.shape_cast %166 : vector<1x3x8xf32> to vector<3x8xf32>
    %168 = vector.extract_strided_slice %167 {offsets = [0, 0], sizes = [1, 8], strides = [1, 1]} : vector<3x8xf32> to vector<1x8xf32>
    %169 = vector.broadcast %168 : vector<1x8xf32> to vector<32x8xf32>
    %170 = arith.addf %165, %169 : vector<32x8xf32>
    %171 = vector.extract_strided_slice %170 {offsets = [0, 0], sizes = [32, 4], strides = [1, 1]} : vector<32x8xf32> to vector<32x4xf32>
    %cst_69 = arith.constant 0.000000e+00 : f32
    %172 = vector.broadcast %cst_69 : f32 to vector<32x4xf32>
    %173 = arith.maximumf %171, %172 : vector<32x4xf32>
    %cst_70 = arith.constant dense<0.000000e+00> : vector<4xf32>
    %174 = vector.multi_reduction <add>, %173, %cst_70 [0] : vector<32x4xf32> to vector<4xf32>
    %175 = vector.shape_cast %174 : vector<4xf32> to vector<1x4xf32>
    %cst_71 = arith.constant 3.125000e-02 : f32
    %176 = vector.broadcast %cst_71 : f32 to vector<1x4xf32>
    %177 = arith.mulf %175, %176 : vector<1x4xf32>
    %178 = vector.broadcast %177 : vector<1x4xf32> to vector<32x4xf32>
    %179 = arith.subf %173, %178 : vector<32x4xf32>
    %180 = arith.mulf %179, %179 : vector<32x4xf32>
    %cst_72 = arith.constant dense<0.000000e+00> : vector<4xf32>
    %181 = vector.multi_reduction <add>, %180, %cst_72 [0] : vector<32x4xf32> to vector<4xf32>
    %182 = vector.shape_cast %181 : vector<4xf32> to vector<1x4xf32>
    %cst_73 = arith.constant 3.125000e-02 : f32
    %183 = vector.broadcast %cst_73 : f32 to vector<1x4xf32>
    %184 = arith.mulf %182, %183 : vector<1x4xf32>
    %cst_74 = arith.constant 9.99999974E-6 : f32
    %185 = vector.broadcast %cst_74 : f32 to vector<1x4xf32>
    %186 = arith.addf %184, %185 : vector<1x4xf32>
    %187 = math.rsqrt %186 : vector<1x4xf32>
    %188 = vector.extract_strided_slice %167 {offsets = [1, 0], sizes = [1, 4], strides = [1, 1]} : vector<3x8xf32> to vector<1x4xf32>
    %189 = arith.mulf %187, %188 : vector<1x4xf32>
    %190 = vector.extract_strided_slice %167 {offsets = [2, 0], sizes = [1, 4], strides = [1, 1]} : vector<3x8xf32> to vector<1x4xf32>
    %191 = arith.mulf %177, %189 : vector<1x4xf32>
    %192 = arith.subf %190, %191 : vector<1x4xf32>
    %193 = vector.broadcast %189 : vector<1x4xf32> to vector<32x4xf32>
    %194 = arith.mulf %173, %193 : vector<32x4xf32>
    %195 = vector.broadcast %192 : vector<1x4xf32> to vector<32x4xf32>
    %196 = arith.addf %194, %195 : vector<32x4xf32>
    %c0_75 = arith.constant 0 : index
    %c0_76 = arith.constant 0 : index
    %197 = vector.load %arg8[%c0_75, %c0_76] : memref<32x8xf32, #tpu.memory_space<vmem>>, vector<32x4xf32>
    tpu.vector_store %arg8[%c0_75, %c0_76], %196 {strides = array<i32>} : memref<32x8xf32, #tpu.memory_space<vmem>>, vector<32x4xf32>,
    %198 = vector.extract_strided_slice %170 {offsets = [0, 4], sizes = [32, 4], strides = [1, 1]} : vector<32x8xf32> to vector<32x4xf32>
    %cst_77 = arith.constant dense<0.000000e+00> : vector<4xf32>
    %199 = vector.multi_reduction <add>, %198, %cst_77 [0] : vector<32x4xf32> to vector<4xf32>
    %200 = vector.shape_cast %199 : vector<4xf32> to vector<1x4xf32>
    %cst_78 = arith.constant 3.125000e-02 : f32
    %201 = vector.broadcast %cst_78 : f32 to vector<1x4xf32>
    %202 = arith.mulf %200, %201 : vector<1x4xf32>
    %203 = vector.broadcast %202 : vector<1x4xf32> to vector<32x4xf32>
    %204 = arith.subf %198, %203 : vector<32x4xf32>
    %205 = arith.mulf %204, %204 : vector<32x4xf32>
    %cst_79 = arith.constant dense<0.000000e+00> : vector<4xf32>
    %206 = vector.multi_reduction <add>, %205, %cst_79 [0] : vector<32x4xf32> to vector<4xf32>
    %207 = vector.shape_cast %206 : vector<4xf32> to vector<1x4xf32>
    %cst_80 = arith.constant 3.125000e-02 : f32
    %208 = vector.broadcast %cst_80 : f32 to vector<1x4xf32>
    %209 = arith.mulf %207, %208 : vector<1x4xf32>
    %cst_81 = arith.constant 9.99999974E-6 : f32
    %210 = vector.broadcast %cst_81 : f32 to vector<1x4xf32>
    %211 = arith.addf %209, %210 : vector<1x4xf32>
    %212 = math.rsqrt %211 : vector<1x4xf32>
    %213 = vector.extract_strided_slice %167 {offsets = [1, 4], sizes = [1, 4], strides = [1, 1]} : vector<3x8xf32> to vector<1x4xf32>
    %214 = arith.mulf %212, %213 : vector<1x4xf32>
    %215 = vector.extract_strided_slice %167 {offsets = [2, 4], sizes = [1, 4], strides = [1, 1]} : vector<3x8xf32> to vector<1x4xf32>
    %216 = arith.mulf %202, %214 : vector<1x4xf32>
    %217 = arith.subf %215, %216 : vector<1x4xf32>
    %218 = vector.broadcast %214 : vector<1x4xf32> to vector<32x4xf32>
    %219 = arith.mulf %198, %218 : vector<32x4xf32>
    %220 = vector.broadcast %217 : vector<1x4xf32> to vector<32x4xf32>
    %221 = arith.addf %219, %220 : vector<32x4xf32>
    %c0_82 = arith.constant 0 : index
    %c4_83 = arith.constant 4 : index
    %222 = vector.load %arg8[%c0_82, %c4_83] : memref<32x8xf32, #tpu.memory_space<vmem>>, vector<32x4xf32>
    tpu.vector_store %arg8[%c0_82, %c4_83], %221 {strides = array<i32>} : memref<32x8xf32, #tpu.memory_space<vmem>>, vector<32x4xf32>,
    %c0_84 = arith.constant 0 : index
    %c0_85 = arith.constant 0 : index
    %223 = vector.load %arg8[%c0_84, %c0_85] : memref<32x8xf32, #tpu.memory_space<vmem>>, vector<32x8xf32>
    %224 = vector.shape_cast %223 : vector<32x8xf32> to vector<2x16x8xf32>
    %c0_86 = arith.constant 0 : index
    %c0_87 = arith.constant 0 : index
    %c0_88 = arith.constant 0 : index
    %225 = vector.load %arg5[%c0_86, %c0_87, %c0_88] : memref<2x8x2xf32, #tpu.memory_space<vmem>>, vector<2x8x2xf32>
    "tpu.trace_start"() <{level = 10 : i32, message = "bmn,bnf->bmf"}> : () -> ()
    %cst_89 = arith.constant dense<0.000000e+00> : vector<2x32x8xf32>
    %226 = tpu.matmul %1, %224, %cst_89 {dimension_numbers = #tpu.dot_dimension_numbers<[2], [1], [1], [2], [0, 0, 0, 1, 1, 2], [0], [0]>} : vector<2x32x16xf32>, vector<2x16x8xf32>, vector<2x32x8xf32> -> vector<2x32x8xf32>
    "tpu.trace_stop"() : () -> ()
    %227 = vector.extract_strided_slice %226 {offsets = [0, 0, 0], sizes = [2, 16, 8], strides = [1, 1, 1]} : vector<2x32x8xf32> to vector<2x16x8xf32>
    %228 = vector.shape_cast %227 : vector<2x16x8xf32> to vector<32x8xf32>
    %229 = vector.extract_strided_slice %225 {offsets = [0, 0, 0], sizes = [1, 8, 2], strides = [1, 1, 1]} : vector<2x8x2xf32> to vector<1x8x2xf32>
    %230 = vector.shape_cast %229 : vector<1x8x2xf32> to vector<8x2xf32>
    %cst_90 = arith.constant dense<0.000000e+00> : vector<32x2xf32>
    %231 = tpu.matmul %228, %230, %cst_90 {dimension_numbers = #tpu.dot_dimension_numbers<[1], [0], [0], [1], [0, 0, 1, 1], [], []>} : vector<32x8xf32>, vector<8x2xf32>, vector<32x2xf32> -> vector<32x2xf32>
    %232 = vector.extract_strided_slice %226 {offsets = [0, 16, 0], sizes = [2, 16, 8], strides = [1, 1, 1]} : vector<2x32x8xf32> to vector<2x16x8xf32>
    %233 = vector.shape_cast %232 : vector<2x16x8xf32> to vector<32x8xf32>
    %234 = vector.extract_strided_slice %225 {offsets = [1, 0, 0], sizes = [1, 8, 2], strides = [1, 1, 1]} : vector<2x8x2xf32> to vector<1x8x2xf32>
    %235 = vector.shape_cast %234 : vector<1x8x2xf32> to vector<8x2xf32>
    %cst_91 = arith.constant dense<0.000000e+00> : vector<32x2xf32>
    %236 = tpu.matmul %233, %235, %cst_91 {dimension_numbers = #tpu.dot_dimension_numbers<[1], [0], [0], [1], [0, 0, 1, 1], [], []>} : vector<32x8xf32>, vector<8x2xf32>, vector<32x2xf32> -> vector<32x2xf32>
    %237 = arith.addf %231, %236 : vector<32x2xf32>
    %c0_92 = arith.constant 0 : index
    %c0_93 = arith.constant 0 : index
    %238 = vector.load %arg6[%c0_92, %c0_93] : memref<1x2xf32, #tpu.memory_space<vmem>>, vector<1x2xf32>
    %239 = vector.broadcast %238 : vector<1x2xf32> to vector<32x2xf32>
    %240 = arith.addf %237, %239 : vector<32x2xf32>
    %c0_94 = arith.constant 0 : index
    %c0_95 = arith.constant 0 : index
    %241 = vector.load %arg7[%c0_94, %c0_95] : memref<32x2xf32, #tpu.memory_space<vmem>>, vector<32x2xf32>
    tpu.vector_store %arg7[%c0_94, %c0_95], %240 {strides = array<i32>} : memref<32x2xf32, #tpu.memory_space<vmem>>, vector<32x2xf32>,
    return
  }
  func.func @transform_0(%arg0: i32) -> (i32, i32, i32, i32) {
    %c0_i32 = arith.constant 0 : i32
    %c0_i32_0 = arith.constant 0 : i32
    %c0_i32_1 = arith.constant 0 : i32
    %c0_i32_2 = arith.constant 0 : i32
    %c0_i32_3 = arith.constant 0 : i32
    return %c0_i32, %c0_i32_0, %c0_i32_1, %c0_i32_2 : i32, i32, i32, i32
  }
  func.func @transform_1(%arg0: i32) -> (i32, i32) {
    %c0_i32 = arith.constant 0 : i32
    %c0_i32_0 = arith.constant 0 : i32
    %c0_i32_1 = arith.constant 0 : i32
    return %c0_i32, %c0_i32_0 : i32, i32
  }
  func.func @transform_2(%arg0: i32) -> (i32, i32, i32, i32) {
    %c0_i32 = arith.constant 0 : i32
    %c0_i32_0 = arith.constant 0 : i32
    %c0_i32_1 = arith.constant 0 : i32
    %c0_i32_2 = arith.constant 0 : i32
    %c0_i32_3 = arith.constant 0 : i32
    return %c0_i32, %c0_i32_0, %c0_i32_1, %c0_i32_2 : i32, i32, i32, i32
  }
  func.func @transform_3(%arg0: i32) -> (i32, i32, i32) {
    %c0_i32 = arith.constant 0 : i32
    %c0_i32_0 = arith.constant 0 : i32
    %c0_i32_1 = arith.constant 0 : i32
    %c0_i32_2 = arith.constant 0 : i32
    return %c0_i32, %c0_i32_0, %c0_i32_1 : i32, i32, i32
  }
  func.func @transform_4(%arg0: i32) -> (i32, i32, i32) {
    %c0_i32 = arith.constant 0 : i32
    %c0_i32_0 = arith.constant 0 : i32
    %c0_i32_1 = arith.constant 0 : i32
    %c0_i32_2 = arith.constant 0 : i32
    return %c0_i32, %c0_i32_0, %c0_i32_1 : i32, i32, i32
  }
  func.func @transform_5(%arg0: i32) -> (i32, i32) {
    %c0_i32 = arith.constant 0 : i32
    %c0_i32_0 = arith.constant 0 : i32
    %c0_i32_1 = arith.constant 0 : i32
    return %c0_i32, %c0_i32_0 : i32, i32
  }
  func.func @transform_6(%arg0: i32) -> (i32, i32) {
    %c0_i32 = arith.constant 0 : i32
    %c0_i32_0 = arith.constant 0 : i32
    %c0_i32_1 = arith.constant 0 : i32
    return %c0_i32, %c0_i32_0 : i32, i32
  }
}

</mosaic_0001>

<bundles_post_ra>
// kernel: gnn_multiclass_forward.1
= control target key start
LH: loop header
LB: loop body
LE: loop exit
PB: predicated region body
PF: predicated region fallthrough
CT: control target
= control target key end

     0   :  { %vm35_vm0 = vcmask 64512   ;;  %vm46_vm1 = vcmask 130048   ;;  %v436_v28 = vlaneseq  ;;  %vm513_vm2 = vcmask 64544   ;;  %s2864_s1 = inlined_call_operand.vmem [shape: f32[32,8], index: 1, kind: input, shape index: {}]   ;;  %s2865_s0 = inlined_call_operand.vmem [shape: f32[2,2,16,16], index: 0, kind: input, shape index: {}]   ;;  %s2866_s2 = inlined_call_operand.vmem [shape: f32[3,2,8,8], index: 2, kind: input, shape index: {}]   ;;  %s2867_s3 = inlined_call_operand.vmem [shape: f32[3,3,8], index: 3, kind: input, shape index: {}]   ;;  %s2868_s4 = inlined_call_operand.vmem [shape: f32[2,8,2], index: 4, kind: input, shape index: {}]   ;;  %s2869_s5 = inlined_call_operand.vmem [shape: f32[1,2], index: 5, kind: input, shape index: {}]   ;;  %s2870_s6 = inlined_call_operand.vmem [shape: f32[32,2], index: 6, kind: output, shape index: {}]  }
   0x1   :  { %v31_v0 = vld [vmem:[%s2864_s1] sm:$0xff]  ;;  %v32_v1 = vld [vmem:[%s2864_s1 + $0x8] sm:$0xff]  ;;  %v33_v3 = vld [vmem:[%s2864_s1 + $0x10] sm:$0xff]  ;;  %vm448_vm3 = vcmask 31744   ;;  %vm1985_vm4 = vcmask 15360  }
   0x2   :  { %v2408_v2 = vld [vmem:[%s2865_s0] sm:$0xff]  ;;  %36 = vst.msk [vmem:[#allocation2] sm:$0xff] %vm35_vm0, %v31_v0  ;;  %37 = vst.msk [vmem:[#allocation2 + $0x8] sm:$0xff] %vm35_vm0, %v32_v1  ;;  %v34_v4 = vld [vmem:[%s2864_s1 + $0x18] sm:$0xff]  ;;  %v2487_v29 = vshrl.u32 %v436_v28, 7 }
   0x3   :  { %2157 = vmatprep.mubr.msk.f32.mxu1 %vm46_vm1, %v2408_v2  ;;  %38 = vst.msk [vmem:[#allocation2 + $0x10] sm:$0xff] %vm35_vm0, %v33_v3  ;;  %39 = vst.msk [vmem:[#allocation2 + $0x18] sm:$0xff] %vm35_vm0, %v34_v4  ;;  %v2425_v11 = vld [vmem:[%s2865_s0 + $0x8] sm:$0xff]  ;;  %v2430_v12 = vld [vmem:[%s2865_s0 + $0x10] sm:$0xff] }
   0x4   :  { %v2439_v13 = vld [vmem:[%s2865_s0 + $0x18] sm:$0xff]  ;;  %v2444_v14 = vld [vmem:[%s2865_s0 + $0x20] sm:$0xff]  ;;  %v2453_v15 = vld [vmem:[%s2865_s0 + $0x28] sm:$0xff]  ;;  %v2490_v30 = vsub.s32 0, %v2487_v29 }
   0x5   :  { %v2458_v16 = vld [vmem:[%s2865_s0 + $0x30] sm:$0xff]  ;;  %v2467_v17 = vld [vmem:[%s2865_s0 + $0x38] sm:$0xff]  ;;  %v45_v18 = vld [vmem:[%s2866_s2 + $0x8] sm:$0xff] }
   0x6   :  { %2173 = vmatprep.subr.mxu0 %v45_v18  ;;  %v44_v19 = vld [vmem:[%s2866_s2] sm:$0xff] }
   0x7   :  { %2174 = vmatpush3.msra.mxu0 %v45_v18  ;;  %v2495_v31 = vld [vmem:[%s2867_s3] sm:$0x7] }
   0x8   :  { %2181 = vmatprep.subr.mxu0 %v44_v19  ;;  %v439_v32 = vrot.slane %v2495_v31, %v2490_v30 }
   0x9   :  { %v40_v5 = vld [vmem:[#allocation2] sm:$0xff]  ;;  %v41_v6 = vld [vmem:[#allocation2 + $0x8] sm:$0xff] }
   0xa   :  { %v2297_v7 = vpack.c.bf16 %v41_v6, %v40_v5  ;;  %v42_v8 = vld [vmem:[#allocation2 + $0x10] sm:$0xff]  ;;  %v43_v9 = vld [vmem:[#allocation2 + $0x18] sm:$0xff] }
   0xb   :  { %v2301_v10 = vpack.c.bf16 %v43_v9, %v42_v8 }
   0xc   :  { %2298 = vmatprep.subr.bf16.mxu1 %v2297_v7 }
   0xd   :  { %2300 = vmatpush3.bf16.msra.mxu1 %v2297_v7 }
   0xe   :  { %2302 = vmatprep.subr.bf16.mxu1 %v2301_v10 }
  0x10   :  { %2158 = vmatmul.mubr.msk.f32.vlgmr.msra.gmra.mrb[0].mxu1 %vm46_vm1, %v2425_v11 }
  0x11   :  { %2160 = vmatprep.mubr.msk.f32.mxu1 %vm46_vm1, %v2430_v12  ;;  %2304 = vmatpush3.bf16.msra.mxu1 %v2301_v10 }
  0x14   :  { %2161 = vmatmul.mubr.msk.f32.gmra.mrb[2].mxu1 %vm46_vm1, %v2439_v13 }
  0x15   :  { %2167 = vmatprep.mubr.msk.f32.mxu1 %vm46_vm1, %v2444_v14 }
  0x18   :  { %2168 = vmatmul.mubr.msk.f32.vlgmr.msra.gmra.mrb[4].mxu1 %vm46_vm1, %v2453_v15 }
  0x19   :  { %2170 = vmatprep.mubr.msk.f32.mxu1 %vm46_vm1, %v2458_v16 }
  0x1c   :  { %2171 = vmatmul.mubr.msk.f32.gmra.mrb[6].mxu1 %vm46_vm1, %v2467_v17 }
  0x1d   :  { %2193 = vmatprep.mubr.msk.f32.mxu1 %vm46_vm1, %v2408_v2 }
  0xe3   :  { %v2159_v20 = vpop.f32.mrb[0].mxu1 }
  0xe4   :  { %v125_v21 = vpop.f32.mrb[1].mxu1 }
  0xe7   :  { %v2162_v22 = vpop.f32.mrb[2].mxu1 }
  0xe8   :  { %v135_v23 = vpop.f32.mrb[3].mxu1 }
  0xe9   :  { %2175 = vmatprep.mubr.msk.f32.mxu0 %vm35_vm0, %v135_v23 }
  0xea   :  { %2176 = vmatmul.mubr.msk.f32.vlgmr.msra.gmra.mrb[0].mxu0 %vm35_vm0, %v2162_v22 }
  0xeb   :  { %v2169_v24 = vpop.f32.mrb[4].mxu1  ;;  %2182 = vmatpush3.msra.mxu0 %v44_v19 }
  0xec   :  { %v222_v25 = vpop.f32.mrb[5].mxu1 }
  0xef   :  { %v2172_v26 = vpop.f32.mrb[6].mxu1 }
  0xf0   :  { %v232_v27 = vpop.f32.mrb[7].mxu1 }
  0xf1   :  { %2178 = vmatprep.mubr.msk.f32.mxu0 %vm35_vm0, %v232_v27 }
  0xf2   :  { %2179 = vmatmul.mubr.msk.f32.gmra.mrb[2].mxu0 %vm35_vm0, %v2172_v26 }
  0xf3   :  { %2183 = vmatprep.mubr.msk.f32.mxu0 %vm35_vm0, %v125_v21 }
  0xf6   :  { %2184 = vmatmul.mubr.msk.f32.vlgmr.msra.gmra.mrb[0].mxu0 %vm35_vm0, %v2159_v20 }
  0xf7   :  { %2186 = vmatprep.mubr.msk.f32.mxu0 %vm35_vm0, %v222_v25 }
  0xfa   :  { %2187 = vmatmul.mubr.msk.f32.gmra.mrb[2].mxu0 %vm35_vm0, %v2169_v24 }
 0x1c9   :  { %v2185_v33 = vpop.f32.mrb[0].mxu0 }
 0x1ca   :  { %v2499_v34 = vadd.f32 %v2185_v33, %v439_v32  ;;  %v416_v35 = vpop.f32.mrb[1].mxu0 }
 0x1cb   :  { %v2501_v36 = vadd.f32 %v439_v32, %v416_v35 }
 0x1cc   :  { %v2504_v37 = vmax.f32 %v2499_v34, 0.0  ;;  %v515_v38 = vsel %vm513_vm2, %v2499_v34, 0.0 }
 0x1cd   :  { %v2509_v39 = vmax.f32 %v2501_v36, 0.0  ;;  %v514_v40 = vsel %vm513_vm2, %v2501_v36, 0.0  ;;  %v2188_v41 = vpop.f32.mrb[2].mxu0 }
 0x1ce   :  { %v2513_v42 = vadd.f32 %v2188_v41, %v439_v32  ;;  %v426_v43 = vpop.f32.mrb[3].mxu0  ;;  %v450_v44 = vsel %vm448_vm3, %v2504_v37, 0.0  ;;  %v516_v47 = vadd.f32 %v515_v38, %v514_v40 }
 0x1cf   :  { %v449_v45 = vsel %vm448_vm3, %v2509_v39, 0.0  ;;  %v2519_v46 = vadd.f32 %v439_v32, %v426_v43 }
 0x1d0   :  { %v2522_v48 = vmax.f32 %v2513_v42, 0.0  ;;  %v451_v51 = vadd.f32 %v450_v44, %v449_v45  ;;  %v519_v53 = vsel %vm513_vm2, %v2513_v42, 0.0 }
 0x1d1   :  { %v2525_v49 = vmax.f32 %v2519_v46, 0.0  ;;  %v517_v50 = vsel %vm513_vm2, %v2519_v46, 0.0 }
 0x1d2   :  { %v518_v52 = vadd.f32 %v517_v50, %v516_v47  ;;  %v454_v57 = vsel %vm448_vm3, %v2522_v48, 0.0 }
 0x1d3   :  { %v452_v54 = vsel %vm448_vm3, %v2525_v49, 0.0 }
 0x1d4   :  { %v453_v55 = vadd.f32 %v452_v54, %v451_v51  ;;  %v520_v56 = vadd.f32 %v519_v53, %v518_v52 }
 0x1d6   :  { %v455_v58 = vadd.f32 %v454_v57, %v453_v55  ;;  %v521_v59 = vrot.slane %v520_v56, 4 }
 0x1d8   :  { %v456_v60 = vrot.slane %v455_v58, 4  ;;  %v522_v61 = vadd.f32 %v521_v59, %v520_v56 }
 0x1da   :  { %v457_v62 = vadd.f32 %v456_v60, %v455_v58  ;;  %v523_v63 = vrot.slane %v522_v61, 2 }
 0x1dc   :  { %v458_v0 = vrot.slane %v457_v62, 2  ;;  %v524_v1 = vadd.f32 %v523_v63, %v522_v61 }
 0x1de   :  { %v459_v3 = vadd.f32 %v458_v0, %v457_v62  ;;  %v525_v4 = vrot.slane %v524_v1, 1 }
 0x1e0   :  { %v460_v5 = vrot.slane %v459_v3, 1  ;;  %v526_v6 = vadd.f32 %v525_v4, %v524_v1 }
 0x1e2   :  { %v461_v7 = vadd.f32 %v460_v5, %v459_v3  ;;  %v527_v8 = vmul.f32 0.03125, %v526_v6 }
 0x1e4   :  { %v462_v9 = vmul.f32 0.03125, %v461_v7  ;;  %v528_v10 = vsub.f32 %v2501_v36, %v527_v8  ;;  %v529_v18 = vsub.f32 %v2499_v34, %v527_v8  ;;  %v530_v19 = vsub.f32 %v2519_v46, %v527_v8 }
 0x1e5   :  { %v531_v20 = vsub.f32 %v2513_v42, %v527_v8 }
 0x1e6   :  { %v463_v21 = vsub.f32 %v2509_v39, %v462_v9  ;;  %v464_v22 = vsub.f32 %v2504_v37, %v462_v9  ;;  %v465_v23 = vsub.f32 %v2525_v49, %v462_v9  ;;  %v466_v24 = vsub.f32 %v2522_v48, %v462_v9 }
 0x1e7   :  { %v532_v25 = vmul.f32 %v528_v10, %v528_v10  ;;  %v533_v26 = vmul.f32 %v529_v18, %v529_v18  ;;  %v534_v33 = vmul.f32 %v530_v19, %v530_v19  ;;  %v535_v44 = vmul.f32 %v531_v20, %v531_v20 }
 0x1e8   :  { %v467_v27 = vmul.f32 %v463_v21, %v463_v21  ;;  %v468_v28 = vmul.f32 %v464_v22, %v464_v22  ;;  %v469_v32 = vmul.f32 %v465_v23, %v465_v23  ;;  %v470_v40 = vmul.f32 %v466_v24, %v466_v24 }
 0x1e9   :  { %v536_v35 = vsel %vm513_vm2, %v532_v25, 0.0  ;;  %v537_v38 = vsel %vm513_vm2, %v533_v26, 0.0  ;;  %v539_v51 = vsel %vm513_vm2, %v534_v33, 0.0  ;;  %v541_v55 = vsel %vm513_vm2, %v535_v44, 0.0 }
 0x1ea   :  { %v471_v41 = vsel %vm448_vm3, %v467_v27, 0.0  ;;  %v472_v43 = vsel %vm448_vm3, %v468_v28, 0.0  ;;  %v538_v47 = vadd.f32 %v537_v38, %v536_v35  ;;  %v474_v50 = vsel %vm448_vm3, %v469_v32, 0.0 }
 0x1eb   :  { %v473_v45 = vadd.f32 %v472_v43, %v471_v41  ;;  %v476_v54 = vsel %vm448_vm3, %v470_v40, 0.0  ;;  %v2552_v22 = vsub.s32 1, %v2487_v29  ;;  %v2559_v33 = vsub.s32 2, %v2487_v29 }
 0x1ec   :  { %v540_v53 = vadd.f32 %v539_v51, %v538_v47 }
 0x1ed   :  { %v475_v52 = vadd.f32 %v474_v50, %v473_v45 }
 0x1ee   :  { %v542_v57 = vadd.f32 %v541_v55, %v540_v53 }
 0x1ef   :  { %v477_v56 = vadd.f32 %v476_v54, %v475_v52 }
 0x1f0   :  { %v543_v59 = vrot.slane %v542_v57, 4 }
 0x1f1   :  { %v478_v58 = vrot.slane %v477_v56, 4 }
 0x1f2   :  { %v544_v61 = vadd.f32 %v543_v59, %v542_v57  ;;  %v2011_v57 = vld [vmem:[%s2866_s2 + $0x18] sm:$0xff] }
 0x1f3   :  { %v479_v60 = vadd.f32 %v478_v58, %v477_v56  ;;  %2209 = vmatprep.subr.mxu0 %v2011_v57  ;;  %v2010_v58 = vld [vmem:[%s2866_s2 + $0x10] sm:$0xff] }
 0x1f4   :  { %v545_v63 = vrot.slane %v544_v61, 2  ;;  %2210 = vmatpush3.msra.mxu0 %v2011_v57 }
 0x1f5   :  { %v480_v62 = vrot.slane %v479_v60, 2  ;;  %2217 = vmatprep.subr.mxu0 %v2010_v58 }
 0x1f6   :  { %v546_v1 = vadd.f32 %v545_v63, %v544_v61 }
 0x1f7   :  { %v481_v0 = vadd.f32 %v480_v62, %v479_v60 }
 0x1f8   :  { %v547_v4 = vrot.slane %v546_v1, 1 }
 0x1f9   :  { %v482_v3 = vrot.slane %v481_v0, 1 }
 0x1fa   :  { %v548_v6 = vadd.f32 %v547_v4, %v546_v1  ;;  %v2614_v4 = vld [vmem:[%s2867_s3 + $0x4] sm:$0x7] }
 0x1fb   :  { %v483_v5 = vadd.f32 %v482_v3, %v481_v0 }
 0x1fc   :  { %v549_v10 = vmul.f32 0.03125, %v548_v6 }
 0x1fd   :  { %v484_v7 = vmul.f32 0.03125, %v483_v5  ;;  %v954_v5 = vrot.slane %v2614_v4, %v2490_v30 }
 0x1fe   :  { %v550_v19 = vadd.f32 1e-05, %v549_v10 }
 0x1ff   :  { %v485_v18 = vadd.f32 1e-05, %v484_v7 }
 0x201   :  { %2345 = vrsqrt.f32 %v485_v18 }
 0x202   :  { %2347 = vrsqrt.f32 %v550_v19 }
 0x20b   :  { %v2346_v20 = vpop.eup %2345 }
 0x20c   :  { %v2348_v21 = vpop.eup %2347  ;;  %v487_v23 = vmul.f32 %v2346_v20, %v2495_v31 }
 0x20d   :  { %v552_v24 = vmul.f32 %v2348_v21, %v2495_v31 }
 0x20e   :  { %v488_v25 = vmul.f32 %v487_v23, %v462_v9  ;;  %v496_v26 = vrot.slane %v487_v23, %v2552_v22 }
 0x20f   :  { %v553_v27 = vmul.f32 %v552_v24, %v527_v8  ;;  %v561_v32 = vrot.slane %v552_v24, %v2552_v22 }
 0x210   :  { %v490_v28 = vrot.slane %v488_v25, 7  ;;  %v497_v40 = vmul.f32 %v496_v26, %v2509_v39  ;;  %v498_v41 = vmul.f32 %v496_v26, %v2504_v37  ;;  %v499_v9 = vmul.f32 %v496_v26, %v2525_v49 }
 0x211   :  { %v555_v35 = vrot.slane %v553_v27, 7  ;;  %v500_v44 = vmul.f32 %v496_v26, %v2522_v48  ;;  %v562_v45 = vmul.f32 %v561_v32, %v2501_v36  ;;  %v563_v29 = vmul.f32 %v561_v32, %v2499_v34 }
 0x212   :  { %v492_v38 = vsub.f32 %v2495_v31, %v490_v28  ;;  %v564_v47 = vmul.f32 %v561_v32, %v2519_v46  ;;  %v565_v50 = vmul.f32 %v561_v32, %v2513_v42 }
 0x213   :  { %v557_v43 = vsub.f32 %v2495_v31, %v555_v35 }
 0x214   :  { %v504_v8 = vrot.slane %v492_v38, %v2559_v33 }
 0x215   :  { %v569_v39 = vrot.slane %v557_v43, %v2559_v33 }
 0x216   :  { %v505_v51 = vadd.f32 %v504_v8, %v497_v40  ;;  %v506_v37 = vadd.f32 %v504_v8, %v498_v41  ;;  %v507_v52 = vadd.f32 %v504_v8, %v499_v9  ;;  %v508_v31 = vadd.f32 %v504_v8, %v500_v44 }
 0x217   :  { %v570_v53 = vadd.f32 %v569_v39, %v562_v45  ;;  %v571_v49 = vadd.f32 %v569_v39, %v563_v29  ;;  %v572_v54 = vadd.f32 %v569_v39, %v564_v47  ;;  %v573_v48 = vadd.f32 %v569_v39, %v565_v50 }
 0x218   :  { %509 = vst.msk [vmem:[#allocation2] sm:$0xff] %vm448_vm3, %v505_v51  ;;  %510 = vst.msk [vmem:[#allocation2 + $0x8] sm:$0xff] %vm448_vm3, %v506_v37 }
 0x219   :  { %511 = vst.msk [vmem:[#allocation2 + $0x10] sm:$0xff] %vm448_vm3, %v507_v52  ;;  %512 = vst.msk [vmem:[#allocation2 + $0x18] sm:$0xff] %vm448_vm3, %v508_v31 }
 0x21a   :  { %574 = vst.msk [vmem:[#allocation2] sm:$0xff] %vm513_vm2, %v570_v53  ;;  %575 = vst.msk [vmem:[#allocation2 + $0x8] sm:$0xff] %vm513_vm2, %v571_v49 }
 0x21b   :  { %576 = vst.msk [vmem:[#allocation2 + $0x10] sm:$0xff] %vm513_vm2, %v572_v54  ;;  %577 = vst.msk [vmem:[#allocation2 + $0x18] sm:$0xff] %vm513_vm2, %v573_v48 }
 0x221   :  { %v578_v34 = vld [vmem:[#allocation2] sm:$0xff]  ;;  %v579_v36 = vld [vmem:[#allocation2 + $0x8] sm:$0xff] }
 0x222   :  { %v580_v42 = vld [vmem:[#allocation2 + $0x10] sm:$0xff]  ;;  %v2305_v46 = vpack.c.bf16 %v579_v36, %v578_v34  ;;  %v581_v55 = vld [vmem:[#allocation2 + $0x18] sm:$0xff] }
 0x223   :  { %v2309_v56 = vpack.c.bf16 %v581_v55, %v580_v42 }
 0x224   :  { %2306 = vmatprep.subr.bf16.mxu1 %v2305_v46 }
 0x225   :  { %2308 = vmatpush3.bf16.msra.mxu1 %v2305_v46 }
 0x226   :  { %2310 = vmatprep.subr.bf16.mxu1 %v2309_v56 }
 0x228   :  { %2194 = vmatmul.mubr.msk.f32.vlgmr.msra.gmra.mrb[8].mxu1 %vm46_vm1, %v2425_v11 }
 0x229   :  { %2312 = vmatpush3.bf16.msra.mxu1 %v2309_v56  ;;  %2196 = vmatprep.mubr.msk.f32.mxu1 %vm46_vm1, %v2430_v12 }
 0x22c   :  { %2197 = vmatmul.mubr.msk.f32.gmra.mrb[10].mxu1 %vm46_vm1, %v2439_v13 }
 0x22d   :  { %2203 = vmatprep.mubr.msk.f32.mxu1 %vm46_vm1, %v2444_v14 }
 0x230   :  { %2204 = vmatmul.mubr.msk.f32.vlgmr.msra.gmra.mrb[12].mxu1 %vm46_vm1, %v2453_v15 }
 0x231   :  { %2206 = vmatprep.mubr.msk.f32.mxu1 %vm46_vm1, %v2458_v16 }
 0x234   :  { %2207 = vmatmul.mubr.msk.f32.gmra.mrb[14].mxu1 %vm46_vm1, %v2467_v17 }
 0x235   :  { %2229 = vmatprep.mubr.msk.f32.mxu1 %vm46_vm1, %v2408_v2 }
 0x2fb   :  { %v2195_v59 = vpop.f32.mrb[8].mxu1 }
 0x2fc   :  { %v651_v60 = vpop.f32.mrb[9].mxu1 }
 0x2ff   :  { %v2198_v61 = vpop.f32.mrb[10].mxu1 }
 0x300   :  { %v661_v62 = vpop.f32.mrb[11].mxu1 }
 0x301   :  { %2211 = vmatprep.mubr.msk.f32.mxu0 %vm35_vm0, %v661_v62 }
 0x302   :  { %2212 = vmatmul.mubr.msk.f32.vlgmr.msra.gmra.mrb[4].mxu0 %vm35_vm0, %v2198_v61 }
 0x303   :  { %v2205_v63 = vpop.f32.mrb[12].mxu1  ;;  %2218 = vmatpush3.msra.mxu0 %v2010_v58 }
 0x304   :  { %v736_v0 = vpop.f32.mrb[13].mxu1 }
 0x307   :  { %v2208_v1 = vpop.f32.mrb[14].mxu1 }
 0x308   :  { %v746_v3 = vpop.f32.mrb[15].mxu1 }
 0x309   :  { %2214 = vmatprep.mubr.msk.f32.mxu0 %vm35_vm0, %v746_v3 }
 0x30a   :  { %2215 = vmatmul.mubr.msk.f32.gmra.mrb[6].mxu0 %vm35_vm0, %v2208_v1 }
 0x30b   :  { %2219 = vmatprep.mubr.msk.f32.mxu0 %vm35_vm0, %v651_v60 }
 0x30e   :  { %2220 = vmatmul.mubr.msk.f32.vlgmr.msra.gmra.mrb[4].mxu0 %vm35_vm0, %v2195_v59 }
 0x30f   :  { %2222 = vmatprep.mubr.msk.f32.mxu0 %vm35_vm0, %v736_v0 }
 0x312   :  { %2223 = vmatmul.mubr.msk.f32.gmra.mrb[6].mxu0 %vm35_vm0, %v2205_v63 }
 0x3e1   :  { %v2221_v6 = vpop.f32.mrb[4].mxu0 }
 0x3e2   :  { %v2618_v7 = vadd.f32 %v2221_v6, %v954_v5  ;;  %v930_v10 = vpop.f32.mrb[5].mxu0 }
 0x3e3   :  { %v2620_v18 = vadd.f32 %v954_v5, %v930_v10 }
 0x3e4   :  { %v2623_v19 = vmax.f32 %v2618_v7, 0.0  ;;  %v1028_v20 = vsel %vm513_vm2, %v2618_v7, 0.0 }
 0x3e5   :  { %v2628_v21 = vmax.f32 %v2620_v18, 0.0  ;;  %v1027_v23 = vsel %vm513_vm2, %v2620_v18, 0.0  ;;  %v2224_v24 = vpop.f32.mrb[6].mxu0 }
 0x3e6   :  { %v2632_v25 = vadd.f32 %v2224_v24, %v954_v5  ;;  %v940_v26 = vpop.f32.mrb[7].mxu0  ;;  %v964_v27 = vsel %vm448_vm3, %v2623_v19, 0.0  ;;  %v1029_v35 = vadd.f32 %v1028_v20, %v1027_v23 }
 0x3e7   :  { %v963_v28 = vsel %vm448_vm3, %v2628_v21, 0.0  ;;  %v2638_v32 = vadd.f32 %v954_v5, %v940_v26 }
 0x3e8   :  { %v2641_v38 = vmax.f32 %v2632_v25, 0.0  ;;  %v965_v43 = vadd.f32 %v964_v27, %v963_v28  ;;  %v1032_v44 = vsel %vm513_vm2, %v2632_v25, 0.0 }
 0x3e9   :  { %v2644_v40 = vmax.f32 %v2638_v32, 0.0  ;;  %v1030_v41 = vsel %vm513_vm2, %v2638_v32, 0.0 }
 0x3ea   :  { %v1031_v9 = vadd.f32 %v1030_v41, %v1029_v35  ;;  %v968_v47 = vsel %vm448_vm3, %v2641_v38, 0.0 }
 0x3eb   :  { %v966_v8 = vsel %vm448_vm3, %v2644_v40, 0.0 }
 0x3ec   :  { %v967_v45 = vadd.f32 %v966_v8, %v965_v43  ;;  %v1033_v29 = vadd.f32 %v1032_v44, %v1031_v9 }
 0x3ee   :  { %v969_v50 = vadd.f32 %v968_v47, %v967_v45  ;;  %v1034_v39 = vrot.slane %v1033_v29, 4 }
 0x3f0   :  { %v970_v51 = vrot.slane %v969_v50, 4  ;;  %v1035_v37 = vadd.f32 %v1034_v39, %v1033_v29 }
 0x3f2   :  { %v971_v52 = vadd.f32 %v970_v51, %v969_v50  ;;  %v1036_v31 = vrot.slane %v1035_v37, 2 }
 0x3f4   :  { %v972_v53 = vrot.slane %v971_v52, 2  ;;  %v1037_v49 = vadd.f32 %v1036_v31, %v1035_v37 }
 0x3f6   :  { %v973_v54 = vadd.f32 %v972_v53, %v971_v52  ;;  %v1038_v48 = vrot.slane %v1037_v49, 1 }
 0x3f8   :  { %v974_v34 = vrot.slane %v973_v54, 1  ;;  %v1039_v36 = vadd.f32 %v1038_v48, %v1037_v49 }
 0x3fa   :  { %v975_v42 = vadd.f32 %v974_v34, %v973_v54  ;;  %v1040_v46 = vmul.f32 0.03125, %v1039_v36 }
 0x3fc   :  { %v976_v55 = vmul.f32 0.03125, %v975_v42  ;;  %v1041_v56 = vsub.f32 %v2620_v18, %v1040_v46  ;;  %v1042_v57 = vsub.f32 %v2618_v7, %v1040_v46  ;;  %v1043_v58 = vsub.f32 %v2638_v32, %v1040_v46 }
 0x3fd   :  { %v1044_v59 = vsub.f32 %v2632_v25, %v1040_v46 }
 0x3fe   :  { %v977_v60 = vsub.f32 %v2628_v21, %v976_v55  ;;  %v978_v61 = vsub.f32 %v2623_v19, %v976_v55  ;;  %v979_v62 = vsub.f32 %v2644_v40, %v976_v55  ;;  %v980_v63 = vsub.f32 %v2641_v38, %v976_v55 }
 0x3ff   :  { %v1045_v0 = vmul.f32 %v1041_v56, %v1041_v56  ;;  %v1046_v1 = vmul.f32 %v1042_v57, %v1042_v57  ;;  %v1047_v10 = vmul.f32 %v1043_v58, %v1043_v58  ;;  %v1048_v28 = vmul.f32 %v1044_v59, %v1044_v59 }
 0x400   :  { %v981_v3 = vmul.f32 %v977_v60, %v977_v60  ;;  %v982_v5 = vmul.f32 %v978_v61, %v978_v61  ;;  %v983_v6 = vmul.f32 %v979_v62, %v979_v62  ;;  %v984_v24 = vmul.f32 %v980_v63, %v980_v63 }
 0x401   :  { %v1049_v20 = vsel %vm513_vm2, %v1045_v0, 0.0  ;;  %v1050_v23 = vsel %vm513_vm2, %v1046_v1, 0.0  ;;  %v1052_v9 = vsel %vm513_vm2, %v1047_v10, 0.0  ;;  %v1054_v29 = vsel %vm513_vm2, %v1048_v28, 0.0 }
 0x402   :  { %v985_v26 = vsel %vm448_vm3, %v981_v3, 0.0  ;;  %v986_v27 = vsel %vm448_vm3, %v982_v5, 0.0  ;;  %v1051_v41 = vadd.f32 %v1050_v23, %v1049_v20  ;;  %v988_v43 = vsel %vm448_vm3, %v983_v6, 0.0 }
 0x403   :  { %v987_v35 = vadd.f32 %v986_v27, %v985_v26  ;;  %v990_v45 = vsel %vm448_vm3, %v984_v24, 0.0 }
 0x404   :  { %v1053_v8 = vadd.f32 %v1052_v9, %v1051_v41 }
 0x405   :  { %v989_v44 = vadd.f32 %v988_v43, %v987_v35 }
 0x406   :  { %v1055_v50 = vadd.f32 %v1054_v29, %v1053_v8 }
 0x407   :  { %v991_v47 = vadd.f32 %v990_v45, %v989_v44 }
 0x408   :  { %v1056_v51 = vrot.slane %v1055_v50, 4 }
 0x409   :  { %v992_v39 = vrot.slane %v991_v47, 4 }
 0x40a   :  { %v1057_v52 = vadd.f32 %v1056_v51, %v1055_v50  ;;  %v2727_v51 = vld [vmem:[%s2867_s3 + $0x8] sm:$0x7] }
 0x40b   :  { %v993_v37 = vadd.f32 %v992_v39, %v991_v47 }
 0x40c   :  { %v1058_v53 = vrot.slane %v1057_v52, 2 }
 0x40d   :  { %v994_v31 = vrot.slane %v993_v37, 2 }
 0x40e   :  { %v1059_v54 = vadd.f32 %v1058_v53, %v1057_v52 }
 0x40f   :  { %v995_v49 = vadd.f32 %v994_v31, %v993_v37  ;;  %v1467_v37 = vrot.slane %v2727_v51, %v2490_v30 }
 0x410   :  { %v1060_v34 = vrot.slane %v1059_v54, 1 }
 0x411   :  { %v996_v48 = vrot.slane %v995_v49, 1 }
 0x412   :  { %v1061_v42 = vadd.f32 %v1060_v34, %v1059_v54 }
 0x413   :  { %v997_v36 = vadd.f32 %v996_v48, %v995_v49 }
 0x414   :  { %v1062_v57 = vmul.f32 0.03125, %v1061_v42 }
 0x415   :  { %v998_v56 = vmul.f32 0.03125, %v997_v36 }
 0x416   :  { %v1063_v59 = vadd.f32 1e-05, %v1062_v57 }
 0x417   :  { %v999_v58 = vadd.f32 1e-05, %v998_v56 }
 0x419   :  { %2349 = vrsqrt.f32 %v999_v58 }
 0x41a   :  { %2351 = vrsqrt.f32 %v1063_v59 }
 0x423   :  { %v2350_v60 = vpop.eup %2349 }
 0x424   :  { %v2352_v61 = vpop.eup %2351  ;;  %v1001_v62 = vmul.f32 %v2350_v60, %v2614_v4 }
 0x425   :  { %v1065_v63 = vmul.f32 %v2352_v61, %v2614_v4 }
 0x426   :  { %v1002_v0 = vmul.f32 %v1001_v62, %v976_v55  ;;  %v1010_v1 = vrot.slane %v1001_v62, %v2552_v22 }
 0x427   :  { %v1066_v3 = vmul.f32 %v1065_v63, %v1040_v46  ;;  %v1074_v6 = vrot.slane %v1065_v63, %v2552_v22 }
 0x428   :  { %v1004_v5 = vrot.slane %v1002_v0, 7  ;;  %v1011_v23 = vmul.f32 %v1010_v1, %v2628_v21  ;;  %v1012_v24 = vmul.f32 %v1010_v1, %v2623_v19  ;;  %v1013_v27 = vmul.f32 %v1010_v1, %v2644_v40 }
 0x429   :  { %v1068_v10 = vrot.slane %v1066_v3, 7  ;;  %v1014_v28 = vmul.f32 %v1010_v1, %v2641_v38  ;;  %v1075_v46 = vmul.f32 %v1074_v6, %v2620_v18  ;;  %v1076_v35 = vmul.f32 %v1074_v6, %v2618_v7 }
 0x42a   :  { %v1006_v20 = vsub.f32 %v2614_v4, %v1004_v5  ;;  %v1077_v41 = vmul.f32 %v1074_v6, %v2638_v32  ;;  %v1078_v43 = vmul.f32 %v1074_v6, %v2632_v25 }
 0x42b   :  { %v1070_v26 = vsub.f32 %v2614_v4, %v1068_v10 }
 0x42c   :  { %v1018_v55 = vrot.slane %v1006_v20, %v2559_v33 }
 0x42d   :  { %v1082_v21 = vrot.slane %v1070_v26, %v2559_v33 }
 0x42e   :  { %v1019_v9 = vadd.f32 %v1018_v55, %v1011_v23  ;;  %v1020_v19 = vadd.f32 %v1018_v55, %v1012_v24  ;;  %v1021_v44 = vadd.f32 %v1018_v55, %v1013_v27  ;;  %v1022_v4 = vadd.f32 %v1018_v55, %v1014_v28 }
 0x42f   :  { %v1083_v8 = vadd.f32 %v1082_v21, %v1075_v46  ;;  %v1084_v40 = vadd.f32 %v1082_v21, %v1076_v35  ;;  %v1085_v45 = vadd.f32 %v1082_v21, %v1077_v41  ;;  %v1086_v38 = vadd.f32 %v1082_v21, %v1078_v43 }
 0x430   :  { %1023 = vst.msk [vmem:[#allocation2] sm:$0xff] %vm448_vm3, %v1019_v9  ;;  %1024 = vst.msk [vmem:[#allocation2 + $0x8] sm:$0xff] %vm448_vm3, %v1020_v19 }
 0x431   :  { %1025 = vst.msk [vmem:[#allocation2 + $0x10] sm:$0xff] %vm448_vm3, %v1021_v44  ;;  %1026 = vst.msk [vmem:[#allocation2 + $0x18] sm:$0xff] %vm448_vm3, %v1022_v4 }
 0x432   :  { %1087 = vst.msk [vmem:[#allocation2] sm:$0xff] %vm513_vm2, %v1083_v8  ;;  %1088 = vst.msk [vmem:[#allocation2 + $0x8] sm:$0xff] %vm513_vm2, %v1084_v40 }
 0x433   :  { %1089 = vst.msk [vmem:[#allocation2 + $0x10] sm:$0xff] %vm513_vm2, %v1085_v45  ;;  %1090 = vst.msk [vmem:[#allocation2 + $0x18] sm:$0xff] %vm513_vm2, %v1086_v38 }
 0x439   :  { %v1091_v7 = vld [vmem:[#allocation2] sm:$0xff]  ;;  %v1092_v18 = vld [vmem:[#allocation2 + $0x8] sm:$0xff] }
 0x43a   :  { %v1093_v25 = vld [vmem:[#allocation2 + $0x10] sm:$0xff]  ;;  %v2313_v32 = vpack.c.bf16 %v1092_v18, %v1091_v7  ;;  %v1094_v29 = vld [vmem:[#allocation2 + $0x18] sm:$0xff] }
 0x43b   :  { %v2317_v47 = vpack.c.bf16 %v1094_v29, %v1093_v25 }
 0x43c   :  { %2314 = vmatprep.subr.bf16.mxu1 %v2313_v32 }
 0x43d   :  { %2316 = vmatpush3.bf16.msra.mxu1 %v2313_v32 }
 0x43e   :  { %2318 = vmatprep.subr.bf16.mxu1 %v2317_v47 }
 0x440   :  { %2230 = vmatmul.mubr.msk.f32.vlgmr.msra.gmra.mrb[16].mxu1 %vm46_vm1, %v2425_v11  ;;  %v2030_v11 = vld [vmem:[%s2866_s2 + $0x28] sm:$0xff] }
 0x441   :  { %2320 = vmatpush3.bf16.msra.mxu1 %v2317_v47  ;;  %2232 = vmatprep.mubr.msk.f32.mxu1 %vm46_vm1, %v2430_v12  ;;  %v2029_v12 = vld [vmem:[%s2866_s2 + $0x20] sm:$0xff] }
 0x442   :  { %2245 = vmatprep.subr.mxu0 %v2030_v11 }
 0x443   :  { %2246 = vmatpush3.msra.mxu0 %v2030_v11 }
 0x444   :  { %2233 = vmatmul.mubr.msk.f32.gmra.mrb[18].mxu1 %vm46_vm1, %v2439_v13  ;;  %2253 = vmatprep.subr.mxu0 %v2029_v12 }
 0x445   :  { %2239 = vmatprep.mubr.msk.f32.mxu1 %vm46_vm1, %v2444_v14 }
 0x448   :  { %2240 = vmatmul.mubr.msk.f32.vlgmr.msra.gmra.mrb[20].mxu1 %vm46_vm1, %v2453_v15 }
 0x449   :  { %2242 = vmatprep.mubr.msk.f32.mxu1 %vm46_vm1, %v2458_v16 }
 0x44c   :  { %2243 = vmatmul.mubr.msk.f32.gmra.mrb[22].mxu1 %vm46_vm1, %v2467_v17 }
 0x44d   :  { %2265 = vmatprep.mubr.msk.f32.mxu1 %vm46_vm1, %v2408_v2 }
 0x513   :  { %v2231_v13 = vpop.f32.mrb[16].mxu1 }
 0x514   :  { %v1164_v14 = vpop.f32.mrb[17].mxu1 }
 0x517   :  { %v2234_v15 = vpop.f32.mrb[18].mxu1 }
 0x518   :  { %v1174_v16 = vpop.f32.mrb[19].mxu1 }
 0x519   :  { %2247 = vmatprep.mubr.msk.f32.mxu0 %vm35_vm0, %v1174_v16 }
 0x51a   :  { %2248 = vmatmul.mubr.msk.f32.vlgmr.msra.gmra.mrb[8].mxu0 %vm35_vm0, %v2234_v15 }
 0x51b   :  { %v2241_v2 = vpop.f32.mrb[20].mxu1  ;;  %2254 = vmatpush3.msra.mxu0 %v2029_v12 }
 0x51c   :  { %v1249_v17 = vpop.f32.mrb[21].mxu1 }
 0x51f   :  { %v2244_v50 = vpop.f32.mrb[22].mxu1 }
 0x520   :  { %v1259_v39 = vpop.f32.mrb[23].mxu1 }
 0x521   :  { %2250 = vmatprep.mubr.msk.f32.mxu0 %vm35_vm0, %v1259_v39 }
 0x522   :  { %2251 = vmatmul.mubr.msk.f32.gmra.mrb[10].mxu0 %vm35_vm0, %v2244_v50 }
 0x523   :  { %2255 = vmatprep.mubr.msk.f32.mxu0 %vm35_vm0, %v1164_v14 }
 0x526   :  { %2256 = vmatmul.mubr.msk.f32.vlgmr.msra.gmra.mrb[8].mxu0 %vm35_vm0, %v2231_v13 }
 0x527   :  { %2258 = vmatprep.mubr.msk.f32.mxu0 %vm35_vm0, %v1249_v17 }
 0x52a   :  { %2259 = vmatmul.mubr.msk.f32.gmra.mrb[10].mxu0 %vm35_vm0, %v2241_v2 }
 0x5f9   :  { %v2257_v52 = vpop.f32.mrb[8].mxu0 }
 0x5fa   :  { %v2731_v31 = vadd.f32 %v2257_v52, %v1467_v37  ;;  %v1443_v53 = vpop.f32.mrb[9].mxu0 }
 0x5fb   :  { %v2733_v49 = vadd.f32 %v1467_v37, %v1443_v53 }
 0x5fc   :  { %v2736_v54 = vmax.f32 %v2731_v31, 0.0  ;;  %v1541_v48 = vsel %vm513_vm2, %v2731_v31, 0.0 }
 0x5fd   :  { %v2741_v34 = vmax.f32 %v2733_v49, 0.0  ;;  %v1540_v36 = vsel %vm513_vm2, %v2733_v49, 0.0  ;;  %v2260_v42 = vpop.f32.mrb[10].mxu0 }
 0x5fe   :  { %v2745_v30 = vadd.f32 %v2260_v42, %v1467_v37  ;;  %v1453_v56 = vpop.f32.mrb[11].mxu0  ;;  %v1477_v57 = vsel %vm448_vm3, %v2736_v54, 0.0  ;;  %v1542_v60 = vadd.f32 %v1541_v48, %v1540_v36 }
 0x5ff   :  { %v1476_v58 = vsel %vm448_vm3, %v2741_v34, 0.0  ;;  %v2751_v59 = vadd.f32 %v1467_v37, %v1453_v56 }
 0x600   :  { %v2754_v61 = vmax.f32 %v2745_v30, 0.0  ;;  %v1478_v0 = vadd.f32 %v1477_v57, %v1476_v58  ;;  %v1545_v3 = vsel %vm513_vm2, %v2745_v30, 0.0 }
 0x601   :  { %v2757_v62 = vmax.f32 %v2751_v59, 0.0  ;;  %v1543_v63 = vsel %vm513_vm2, %v2751_v59, 0.0 }
 0x602   :  { %v1544_v1 = vadd.f32 %v1543_v63, %v1542_v60  ;;  %v1481_v20 = vsel %vm448_vm3, %v2754_v61, 0.0 }
 0x603   :  { %v1479_v5 = vsel %vm448_vm3, %v2757_v62, 0.0 }
 0x604   :  { %v1480_v6 = vadd.f32 %v1479_v5, %v1478_v0  ;;  %v1546_v10 = vadd.f32 %v1545_v3, %v1544_v1 }
 0x606   :  { %v1482_v23 = vadd.f32 %v1481_v20, %v1480_v6  ;;  %v1547_v24 = vrot.slane %v1546_v10, 4 }
 0x608   :  { %v1483_v26 = vrot.slane %v1482_v23, 4  ;;  %v1548_v27 = vadd.f32 %v1547_v24, %v1546_v10 }
 0x60a   :  { %v1484_v28 = vadd.f32 %v1483_v26, %v1482_v23  ;;  %v1549_v55 = vrot.slane %v1548_v27, 2 }
 0x60c   :  { %v1485_v46 = vrot.slane %v1484_v28, 2  ;;  %v1550_v35 = vadd.f32 %v1549_v55, %v1548_v27 }
 0x60e   :  { %v1486_v41 = vadd.f32 %v1485_v46, %v1484_v28  ;;  %v1551_v43 = vrot.slane %v1550_v35, 1 }
 0x610   :  { %v1487_v21 = vrot.slane %v1486_v41, 1  ;;  %v1552_v9 = vadd.f32 %v1551_v43, %v1550_v35 }
 0x612   :  { %v1488_v19 = vadd.f32 %v1487_v21, %v1486_v41  ;;  %v1553_v44 = vmul.f32 0.03125, %v1552_v9 }
 0x614   :  { %v1489_v4 = vmul.f32 0.03125, %v1488_v19  ;;  %v1554_v8 = vsub.f32 %v2733_v49, %v1553_v44  ;;  %v1555_v40 = vsub.f32 %v2731_v31, %v1553_v44  ;;  %v1556_v45 = vsub.f32 %v2751_v59, %v1553_v44 }
 0x615   :  { %v1557_v38 = vsub.f32 %v2745_v30, %v1553_v44 }
 0x616   :  { %v1490_v7 = vsub.f32 %v2741_v34, %v1489_v4  ;;  %v1491_v18 = vsub.f32 %v2736_v54, %v1489_v4  ;;  %v1492_v25 = vsub.f32 %v2757_v62, %v1489_v4  ;;  %v1493_v32 = vsub.f32 %v2754_v61, %v1489_v4 }
 0x617   :  { %v1558_v29 = vmul.f32 %v1554_v8, %v1554_v8  ;;  %v1559_v47 = vmul.f32 %v1555_v40, %v1555_v40  ;;  %v1560_v14 = vmul.f32 %v1556_v45, %v1556_v45  ;;  %v1561_v39 = vmul.f32 %v1557_v38, %v1557_v38 }
 0x618   :  { %v1494_v11 = vmul.f32 %v1490_v7, %v1490_v7  ;;  %v1495_v12 = vmul.f32 %v1491_v18, %v1491_v18  ;;  %v1496_v13 = vmul.f32 %v1492_v25, %v1492_v25  ;;  %v1497_v2 = vmul.f32 %v1493_v32, %v1493_v32 }
 0x619   :  { %v1562_v15 = vsel %vm513_vm2, %v1558_v29, 0.0  ;;  %v1563_v16 = vsel %vm513_vm2, %v1559_v47, 0.0  ;;  %v1565_v48 = vsel %vm513_vm2, %v1560_v14, 0.0  ;;  %v1567_v57 = vsel %vm513_vm2, %v1561_v39, 0.0  ;;  %v2358_v39 = vld [vmem:[%s2865_s0 + $0x10] sm:$0xff] }
 0x61a   :  { %v1498_v17 = vsel %vm448_vm3, %v1494_v11, 0.0  ;;  %v1499_v50 = vsel %vm448_vm3, %v1495_v12, 0.0  ;;  %v1564_v52 = vadd.f32 %v1563_v16, %v1562_v15  ;;  %v1501_v53 = vsel %vm448_vm3, %v1496_v13, 0.0 }
 0x61b   :  { %v1500_v37 = vadd.f32 %v1499_v50, %v1498_v17  ;;  %v1503_v56 = vsel %vm448_vm3, %v1497_v2, 0.0  ;;  %v2357_v50 = vld [vmem:[%s2865_s0 + $0x8] sm:$0xff] }
 0x61c   :  { %v1566_v42 = vadd.f32 %v1565_v48, %v1564_v52  ;;  %v2360_v52 = vld [vmem:[%s2865_s0 + $0x20] sm:$0xff]  ;;  %v2362_v48 = vld [vmem:[%s2865_s0 + $0x30] sm:$0xff] }
 0x61d   :  { %v1502_v36 = vadd.f32 %v1501_v53, %v1500_v37  ;;  %v2359_v37 = vld [vmem:[%s2865_s0 + $0x18] sm:$0xff]  ;;  %v2361_v53 = vld [vmem:[%s2865_s0 + $0x28] sm:$0xff] }
 0x61e   :  { %v1568_v60 = vadd.f32 %v1567_v57, %v1566_v42  ;;  %v1609_v42 = vld [vmem:[%s2868_s4 + $0x8] sm:$0xff] }
 0x61f   :  { %v1504_v58 = vadd.f32 %v1503_v56, %v1502_v36  ;;  %v2363_v36 = vld [vmem:[%s2865_s0 + $0x38] sm:$0xff]  ;;  %2281 = vmatprep.subr.mxu0 %v1609_v42  ;;  %v1608_v56 = vld [vmem:[%s2868_s4] sm:$0xff] }
 0x620   :  { %v1569_v0 = vrot.slane %v1568_v60, 4  ;;  %2282 = vmatpush3.msra.mxu0 %v1609_v42 }
 0x621   :  { %v1505_v63 = vrot.slane %v1504_v58, 4  ;;  %2289 = vmatprep.subr.mxu0 %v1608_v56 }
 0x622   :  { %v1570_v3 = vadd.f32 %v1569_v0, %v1568_v60 }
 0x623   :  { %v1506_v1 = vadd.f32 %v1505_v63, %v1504_v58 }
 0x624   :  { %v1571_v6 = vrot.slane %v1570_v3, 2 }
 0x625   :  { %v1507_v5 = vrot.slane %v1506_v1, 2 }
 0x626   :  { %v1572_v20 = vadd.f32 %v1571_v6, %v1570_v3  ;;  %v2064_v6 = vld [vmem:[%s2869_s5] ss:$0 sm:$0xff] }
 0x627   :  { %v1508_v10 = vadd.f32 %v1507_v5, %v1506_v1 }
 0x628   :  { %v1573_v24 = vrot.slane %v1572_v20, 1 }
 0x629   :  { %v1509_v23 = vrot.slane %v1508_v10, 1 }
 0x62a   :  { %v1574_v27 = vadd.f32 %v1573_v24, %v1572_v20 }
 0x62b   :  { %v1510_v26 = vadd.f32 %v1509_v23, %v1508_v10 }
 0x62c   :  { %v1575_v55 = vmul.f32 0.03125, %v1574_v27 }
 0x62d   :  { %v1511_v28 = vmul.f32 0.03125, %v1510_v26 }
 0x62e   :  { %v1576_v35 = vadd.f32 1e-05, %v1575_v55 }
 0x62f   :  { %v1512_v46 = vadd.f32 1e-05, %v1511_v28 }
 0x631   :  { %2353 = vrsqrt.f32 %v1512_v46 }
 0x632   :  { %2355 = vrsqrt.f32 %v1576_v35 }
 0x63b   :  { %v2354_v41 = vpop.eup %2353 }
 0x63c   :  { %v2356_v43 = vpop.eup %2355  ;;  %v1514_v21 = vmul.f32 %v2354_v41, %v2727_v51 }
 0x63d   :  { %v1578_v9 = vmul.f32 %v2356_v43, %v2727_v51 }
 0x63e   :  { %v1515_v19 = vmul.f32 %v1514_v21, %v1489_v4  ;;  %v1523_v8 = vrot.slane %v1514_v21, %v2552_v22 }
 0x63f   :  { %v1579_v40 = vmul.f32 %v1578_v9, %v1553_v44  ;;  %v1587_v38 = vrot.slane %v1578_v9, %v2552_v22 }
 0x640   :  { %v1517_v45 = vrot.slane %v1515_v19, 7  ;;  %v1524_v25 = vmul.f32 %v1523_v8, %v2741_v34  ;;  %v1525_v32 = vmul.f32 %v1523_v8, %v2736_v54  ;;  %v1526_v47 = vmul.f32 %v1523_v8, %v2757_v62 }
 0x641   :  { %v1581_v7 = vrot.slane %v1579_v40, 7  ;;  %v1527_v11 = vmul.f32 %v1523_v8, %v2754_v61  ;;  %v1588_v44 = vmul.f32 %v1587_v38, %v2733_v49  ;;  %v1589_v12 = vmul.f32 %v1587_v38, %v2731_v31 }
 0x642   :  { %v1519_v18 = vsub.f32 %v2727_v51, %v1517_v45  ;;  %v1590_v22 = vmul.f32 %v1587_v38, %v2751_v59  ;;  %v1591_v13 = vmul.f32 %v1587_v38, %v2745_v30 }
 0x643   :  { %v1583_v29 = vsub.f32 %v2727_v51, %v1581_v7 }
 0x644   :  { %v1531_v4 = vrot.slane %v1519_v18, %v2559_v33 }
 0x645   :  { %v1595_v34 = vrot.slane %v1583_v29, %v2559_v33 }
 0x646   :  { %v1532_v14 = vadd.f32 %v1531_v4, %v1524_v25  ;;  %v1533_v54 = vadd.f32 %v1531_v4, %v1525_v32  ;;  %v1534_v15 = vadd.f32 %v1531_v4, %v1526_v47  ;;  %v1535_v51 = vadd.f32 %v1531_v4, %v1527_v11 }
 0x647   :  { %v1596_v16 = vadd.f32 %v1595_v34, %v1588_v44  ;;  %v1597_v62 = vadd.f32 %v1595_v34, %v1589_v12  ;;  %v1598_v2 = vadd.f32 %v1595_v34, %v1590_v22  ;;  %v1599_v61 = vadd.f32 %v1595_v34, %v1591_v13 }
 0x648   :  { %1536 = vst.msk [vmem:[#allocation2] sm:$0xff] %vm448_vm3, %v1532_v14  ;;  %1537 = vst.msk [vmem:[#allocation2 + $0x8] sm:$0xff] %vm448_vm3, %v1533_v54 }
 0x649   :  { %1538 = vst.msk [vmem:[#allocation2 + $0x10] sm:$0xff] %vm448_vm3, %v1534_v15  ;;  %1539 = vst.msk [vmem:[#allocation2 + $0x18] sm:$0xff] %vm448_vm3, %v1535_v51 }
 0x64a   :  { %1600 = vst.msk [vmem:[#allocation2] sm:$0xff] %vm513_vm2, %v1596_v16  ;;  %1601 = vst.msk [vmem:[#allocation2 + $0x8] sm:$0xff] %vm513_vm2, %v1597_v62 }
 0x64b   :  { %1602 = vst.msk [vmem:[#allocation2 + $0x10] sm:$0xff] %vm513_vm2, %v1598_v2  ;;  %1603 = vst.msk [vmem:[#allocation2 + $0x18] sm:$0xff] %vm513_vm2, %v1599_v61 }
 0x651   :  { %v1604_v33 = vld [vmem:[#allocation2] sm:$0xff]  ;;  %v1605_v31 = vld [vmem:[#allocation2 + $0x8] sm:$0xff] }
 0x652   :  { %v1606_v49 = vld [vmem:[#allocation2 + $0x10] sm:$0xff]  ;;  %v2321_v30 = vpack.c.bf16 %v1605_v31, %v1604_v33  ;;  %v1607_v59 = vld [vmem:[#allocation2 + $0x18] sm:$0xff] }
 0x653   :  { %v2325_v17 = vpack.c.bf16 %v1607_v59, %v1606_v49 }
 0x654   :  { %2322 = vmatprep.subr.bf16.mxu1 %v2321_v30 }
 0x655   :  { %2324 = vmatpush3.bf16.msra.mxu1 %v2321_v30 }
 0x656   :  { %2326 = vmatprep.subr.bf16.mxu1 %v2325_v17 }
 0x658   :  { %2266 = vmatmul.mubr.msk.f32.vlgmr.msra.gmra.mrb[24].mxu1 %vm46_vm1, %v2357_v50 }
 0x659   :  { %2328 = vmatpush3.bf16.msra.mxu1 %v2325_v17  ;;  %2268 = vmatprep.mubr.msk.f32.mxu1 %vm46_vm1, %v2358_v39 }
 0x65c   :  { %2269 = vmatmul.mubr.msk.f32.gmra.mrb[26].mxu1 %vm46_vm1, %v2359_v37 }
 0x65d   :  { %2275 = vmatprep.mubr.msk.f32.mxu1 %vm46_vm1, %v2360_v52 }
 0x660   :  { %2276 = vmatmul.mubr.msk.f32.vlgmr.msra.gmra.mrb[28].mxu1 %vm46_vm1, %v2361_v53 }
 0x661   :  { %2278 = vmatprep.mubr.msk.f32.mxu1 %vm46_vm1, %v2362_v48 }
 0x664   :  { %2279 = vmatmul.mubr.msk.f32.gmra.mrb[30].mxu1 %vm46_vm1, %v2363_v36 }
 0x72b   :  { %v2267_v57 = vpop.f32.mrb[24].mxu1 }
 0x72c   :  { %v1676_v58 = vpop.f32.mrb[25].mxu1 }
 0x72f   :  { %v2270_v60 = vpop.f32.mrb[26].mxu1 }
 0x730   :  { %v1686_v63 = vpop.f32.mrb[27].mxu1 }
 0x731   :  { %2283 = vmatprep.mubr.msk.f32.mxu0 %vm35_vm0, %v1686_v63 }
 0x732   :  { %2284 = vmatmul.mubr.msk.f32.vlgmr.msra.gmra.mrb[12].mxu0 %vm35_vm0, %v2270_v60 }
 0x733   :  { %v2277_v0 = vpop.f32.mrb[28].mxu1  ;;  %2290 = vmatpush3.msra.mxu0 %v1608_v56 }
 0x734   :  { %v1761_v1 = vpop.f32.mrb[29].mxu1 }
 0x737   :  { %v2280_v3 = vpop.f32.mrb[30].mxu1 }
 0x738   :  { %v1771_v5 = vpop.f32.mrb[31].mxu1 }
 0x739   :  { %2286 = vmatprep.mubr.msk.f32.mxu0 %vm35_vm0, %v1771_v5 }
 0x73a   :  { %2287 = vmatmul.mubr.msk.f32.gmra.mrb[14].mxu0 %vm35_vm0, %v2280_v3 }
 0x73b   :  { %2291 = vmatprep.mubr.msk.f32.mxu0 %vm35_vm0, %v1676_v58 }
 0x73e   :  { %2292 = vmatmul.mubr.msk.f32.vlgmr.msra.gmra.mrb[12].mxu0 %vm35_vm0, %v2267_v57 }
 0x73f   :  { %2294 = vmatprep.mubr.msk.f32.mxu0 %vm35_vm0, %v1761_v1 }
 0x742   :  { %2295 = vmatmul.mubr.msk.f32.gmra.mrb[14].mxu0 %vm35_vm0, %v2277_v0 }
 0x811   :  { %v2293_v10 = vpop.f32.mrb[12].mxu0 }
 0x812   :  { %v1982_v20 = vadd.f32 %v2293_v10, %v2064_v6  ;;  %v1955_v23 = vpop.f32.mrb[13].mxu0 }
 0x813   :  { %v1981_v24 = vadd.f32 %v2064_v6, %v1955_v23 }
 0x814   :  { %1987 = vst.msk [vmem:[%s2870_s6 + $0x8] sm:$0xff] %vm1985_vm4, %v1982_v20 }
 0x815   :  { %1986 = vst.msk [vmem:[%s2870_s6] sm:$0xff] %vm1985_vm4, %v1981_v24  ;;  %v2296_v26 = vpop.f32.mrb[14].mxu0 }
 0x816   :  { %v1984_v27 = vadd.f32 %v2296_v26, %v2064_v6  ;;  %v1965_v28 = vpop.f32.mrb[15].mxu0 }
 0x817   :  { %v1983_v55 = vadd.f32 %v2064_v6, %v1965_v28 }
 0x818   :  { %1989 = vst.msk [vmem:[%s2870_s6 + $0x18] sm:$0xff] %vm1985_vm4, %v1984_v27 }
 0x819   :  { %1988 = vst.msk [vmem:[%s2870_s6 + $0x10] sm:$0xff] %vm1985_vm4, %v1983_v55 }

</bundles_post_ra>
